<compile_context>
chip_gen: v7x
topology: tpu7x:2x2x1
jax: 0.10.0
libtpu: 0.0.40
codegen_flags: <defaults>
</compile_context>

<pallas_src>
import functools

import jax
import jax.numpy as jnp
from jax.experimental import pallas as pl
from jax.experimental.pallas import tpu as pltpu


# ---------------------------------------------------------------------------
# One-time, cached capability / hardware probes (no per-call cost, no host sync).
# ---------------------------------------------------------------------------

@functools.lru_cache(maxsize=1)
def _single_buffer_supported():
    """Does this Pallas build accept pipeline_mode=pl.Buffered(1)?  Probed once."""
    try:
        def _k(x_ref, o_ref):
            o_ref[...] = x_ref[...] + 1.0

        fn = pl.pallas_call(
            _k,
            out_shape=jax.ShapeDtypeStruct((16, 128), jnp.float32),
            grid=(2,),
            in_specs=[pl.BlockSpec((8, 128), lambda i: (i, 0),
                                   pipeline_mode=pl.Buffered(1))],
            out_specs=pl.BlockSpec((8, 128), lambda i: (i, 0)),
        )
        jax.jit(fn).lower(jax.ShapeDtypeStruct((16, 128), jnp.float32)).compile()
        return True
    except Exception:
        return False


@functools.lru_cache(maxsize=1)
def _physical_vmem_bytes():
    """Physical VMEM bytes (per core), or None if the query is unavailable."""
    try:
        return int(pltpu.get_tpu_info().vmem_capacity_bytes)
    except Exception:
        return None


@functools.lru_cache(maxsize=1)
def _is_dual_tensorcore_chip():
    """Best-effort detection of v7x-class parts (2 TensorCores per chip)."""
    try:
        kind = jax.devices()[0].device_kind.lower()
    except Exception:
        return False
    return ("v7" in kind) or ("7x" in kind)


_FALLBACK_VMEM_BUDGET = 12 * 1024 * 1024   # below v5e's 16 MiB default scoped VMEM
_HORNER_MAX_M = 6                          # monomial folding grows like 2^M; cap it


# ---------------------------------------------------------------------------
# Chebyshev activation helpers.
# ---------------------------------------------------------------------------

def _cheb_monomial_coeffs(coeffs):
    """Fold Chebyshev-basis coefficients into monomial coefficients at trace time.

    coeffs: list of M SMEM scalars.  Returns p (length M) with
        sum_m coeffs[m] * T_m(x) == sum_k p[k] * x**k.
    Only O(M^2) scalar adds/muls (scalar unit); no vector work.
    """
    m = len(coeffs)
    p = [None] * m

    def add(k, scale, c):
        term = c if scale == 1.0 else c * scale
        p[k] = term if p[k] is None else p[k] + term

    t_prev = [1.0]            # T_0 monomial coefficients (python floats)
    t_cur = [0.0, 1.0]        # T_1
    add(0, 1.0, coeffs[0])
    if m > 1:
        add(1, 1.0, coeffs[1])
    for k in range(2, m):
        # T_k = 2 x T_{k-1} - T_{k-2}
        t_next = [0.0] * (k + 1)
        for i, c in enumerate(t_cur):
            t_next[i + 1] += 2.0 * c
        for i, c in enumerate(t_prev):
            t_next[i] -= c
        for i, c in enumerate(t_next):
            if c != 0.0:
                add(i, c, coeffs[k])
        t_prev, t_cur = t_cur, t_next
    return [0.0 if v is None else v for v in p]


def _chebyshev_act(y, coeffs, out_dtype):
    """Learnable Chebyshev activation sum_m c_m T_m(y) on an f32 tile.

    Returns the result in `out_dtype` (downcast fused into the final elementwise op).
    """
    m = len(coeffs)
    if m == 1:
        return jnp.broadcast_to(coeffs[0], y.shape).astype(out_dtype)
    if m <= _HORNER_MAX_M:
        # Scalar-folded Horner: 1 vmul + 1 vadd per term, only 2 live full tiles.
        p = _cheb_monomial_coeffs(coeffs)
        acc = p[m - 1] * y + p[m - 2]
        for k in range(m - 3, -1, -1):
            acc = acc * y + p[k]
        return acc.astype(out_dtype)
    # Clenshaw fallback for large M (monomial folding becomes ill-conditioned).
    y2 = y + y
    b1 = jnp.broadcast_to(coeffs[m - 1], y.shape).astype(jnp.float32)
    b2 = jnp.zeros_like(y)
    for k in range(m - 2, 0, -1):
        b1, b2 = coeffs[k] + y2 * b1 - b2, b1
    return (coeffs[0] + y * b1 - b2).astype(out_dtype)


# ---------------------------------------------------------------------------
# Kernels.
# ---------------------------------------------------------------------------

def _mixed1_resident_kernel(x_ref, wh_ref, bh_ref, cc_ref, wo_ref, bo_ref, o_ref,
                            *, hidden_layers, cheb_m):
    """All weights VMEM-resident; single grid axis over batch tiles.

    x_ref : (TB, INP)     bf16    wh_ref: (L, INP, INP) bf16 (pre-transposed)
    bh_ref: (L, 1, INP)   f32     cc_ref: (L*M,)        f32  SMEM (flat)
    wo_ref: (INP, OUT)    bf16    bo_ref: (1, OUT)      f32
    o_ref : (TB, OUT)     f32
    """
    h = x_ref[...]                                         # bf16 activations
    for l in range(hidden_layers):
        y = jnp.dot(h, wh_ref[l], preferred_element_type=jnp.float32) + bh_ref[l]
        coeffs = [cc_ref[l * cheb_m + m] for m in range(cheb_m)]
        h = _chebyshev_act(y, coeffs, out_dtype=jnp.bfloat16)
    # NOTE(v6e/v7x): OUT < 256 half-fills the 256-wide MXU; OUT is a model parameter
    # so we do not pad here.
    out = jnp.dot(h, wo_ref[...], preferred_element_type=jnp.float32) + bo_ref[...]
    o_ref[...] = out.astype(o_ref.dtype)


def _mixed1_stream_kernel(x_ref, wh_ref, bh_ref, cc_ref, wo_ref, bo_ref, o_ref,
                          h_ref, *, hidden_layers, cheb_m):
    """Layer-streaming path: grid = (batch_tiles, L); one hidden weight per step.

    The bf16 activation is carried across the 'arbitrary' layer axis in a VMEM scratch
    (h_ref); the final Linear runs in the last-layer epilogue (P3 pattern).  Keeps
    weight residency ~2*INP^2 bytes regardless of L (v7x's 64 MiB VMEM).
    """
    l = pl.program_id(1)

    @pl.when(l == 0)
    def _():
        h_ref[...] = x_ref[...]

    y = jnp.dot(h_ref[...], wh_ref[0],
                preferred_element_type=jnp.float32) + bh_ref[0]
    coeffs = [cc_ref[l * cheb_m + m] for m in range(cheb_m)]   # dynamic SMEM reads
    h_ref[...] = _chebyshev_act(y, coeffs, out_dtype=jnp.bfloat16)

    @pl.when(l == hidden_layers - 1)
    def _():
        out = jnp.dot(h_ref[...], wo_ref[...],
                      preferred_element_type=jnp.float32) + bo_ref[...]
        o_ref[...] = out.astype(o_ref.dtype)


# ---------------------------------------------------------------------------
# Tiling heuristics + wrapper.
# ---------------------------------------------------------------------------

def _pick_tile_b(B, *, per_row_bytes, fixed_bytes, budget, flops_per_row,
                 prefer_split):
    """Largest batch tile (divisor of B) fitting the VMEM budget.

    The grid is only forced to >=2 steps on dual-TensorCore parts, and only when the
    per-tile MXU work clearly exceeds the ~0.35us/step pipeline overhead.
    """
    candidates = [d for d in range(16, B + 1, 16) if B % d == 0]
    if not candidates:
        candidates = [d for d in range(8, B + 1, 8) if B % d == 0]
    if not candidates:
        return B                                   # full-extent block is always legal
    fitting = [d for d in candidates if fixed_bytes + d * per_row_bytes <= budget]
    tb = max(fitting) if fitting else min(candidates)
    if prefer_split and tb == B:
        halves = [d for d in candidates if d <= B // 2]
        if halves and flops_per_row * (B // 2) > 2e8:   # per-tile work >> step overhead
            tb = max(halves)
    return tb


def mixed1_forward(x, w_hidden, b_hidden, cheb_coeffs, w_out, b_out, *,
                   tile_b=None, layer_stream=None):
    """Fused Mixed1 forward.

    x           : (B, INP)       float (ingested as bf16)
    w_hidden    : (L, INP, INP)  pre-transposed: layer l computes h @ w_hidden[l]
    b_hidden    : (L, 1, INP)    f32
    cheb_coeffs : (L, M)         f32 Chebyshev activation coefficients
    w_out       : (INP, OUT)     pre-transposed final Linear weight
    b_out       : (1, OUT)       f32
    Returns (B, OUT) f32.  (No host sync here -- caller decides when to block.)
    """
    B, INP = x.shape
    L, M = cheb_coeffs.shape
    OUT = w_out.shape[1]
    assert L >= 1 and M >= 1
    assert w_hidden.shape == (L, INP, INP), w_hidden.shape
    assert b_hidden.shape == (L, 1, INP), b_hidden.shape
    assert w_out.shape == (INP, OUT), w_out.shape
    assert b_out.shape == (1, OUT), b_out.shape

    # bf16 ingest: the kernel consumed bf16 before the first dot anyway, so this is
    # bit-identical for layer 1 while halving the per-step x DMA and its buffers.
    x = x.astype(jnp.bfloat16)
    w_hidden = w_hidden.astype(jnp.bfloat16)
    w_out = w_out.astype(jnp.bfloat16)
    b_hidden = b_hidden.astype(jnp.float32)
    b_out = b_out.astype(jnp.float32)
    cheb_flat = cheb_coeffs.reshape(-1).astype(jnp.float32)   # 1-D SMEM (no 2-D pad)

    single_buf = _single_buffer_supported()
    phys_vmem = _physical_vmem_bytes()
    vmem_limit = min(phys_vmem // 2, 96 * 1024 * 1024) if phys_vmem else None
    budget = int((vmem_limit if vmem_limit else _FALLBACK_VMEM_BUDGET) * 0.6)

    hidden_w_bytes = L * INP * INP * 2
    if layer_stream is None:
        # Stream one layer per grid step once resident hidden weights get big for VMEM.
        layer_stream = hidden_w_bytes > min(8 * 1024 * 1024, budget // 3)

    wbuf = 1 if single_buf else 2                    # grid-invariant operand buffering
    tail_bytes = wbuf * (INP * OUT * 2 + OUT * 4)    # final Linear (always resident)
    if layer_stream:
        fixed_bytes = 2 * (INP * INP * 2 + INP * 4) + tail_bytes       # streamed layer x2
        per_row_bytes = 2 * INP * 2 + 2 * OUT * 4 + 3 * INP * 4 + INP * 2
    else:
        fixed_bytes = wbuf * (hidden_w_bytes + L * INP * 4) + tail_bytes
        per_row_bytes = 2 * INP * 2 + 2 * OUT * 4 + 3 * INP * 4

    flops_per_row = 2 * INP * (L * INP + OUT)
    if tile_b is None:
        TB = _pick_tile_b(B, per_row_bytes=per_row_bytes, fixed_bytes=fixed_bytes,
                          budget=budget, flops_per_row=flops_per_row,
                          prefer_split=_is_dual_tensorcore_chip())
    else:
        TB = tile_b
    assert B % TB == 0, (B, TB)

    def wspec(shape, index_map):
        # Grid-invariant operands: single-buffer when the build supports the hint.
        if single_buf:
            return pl.BlockSpec(shape, index_map, pipeline_mode=pl.Buffered(1))
        return pl.BlockSpec(shape, index_map)

    cost = pl.CostEstimate(
        flops=2 * B * INP * (L * INP + OUT),
        transcendentals=0,
        bytes_accessed=(B * INP * 2 + hidden_w_bytes + L * INP * 4 + L * M * 4
                        + INP * OUT * 2 + OUT * 4 + B * OUT * 4),
    )

    cp_kwargs = {}
    if vmem_limit is not None:
        cp_kwargs["vmem_limit_bytes"] = int(vmem_limit)

    out_shape = jax.ShapeDtypeStruct((B, OUT), jnp.float32)

    if not layer_stream:
        kernel = functools.partial(_mixed1_resident_kernel,
                                   hidden_layers=L, cheb_m=M)
        grid_spec = pltpu.PrefetchScalarGridSpec(
            num_scalar_prefetch=0,
            grid=(B // TB,),
            in_specs=[
                pl.BlockSpec((TB, INP), lambda i: (i, 0)),            # x (batch-tiled)
                wspec((L, INP, INP), lambda i: (0, 0, 0)),            # hidden weights
                wspec((L, 1, INP), lambda i: (0, 0, 0)),              # hidden biases
                pl.BlockSpec(memory_space=pltpu.MemorySpace.SMEM),    # cheb coeffs
                wspec((INP, OUT), lambda i: (0, 0)),                  # final weight
                wspec((1, OUT), lambda i: (0, 0)),                    # final bias
            ],
            out_specs=pl.BlockSpec((TB, OUT), lambda i: (i, 0)),
        )
        dim_sem = ("parallel",)
    else:
        kernel = functools.partial(_mixed1_stream_kernel,
                                   hidden_layers=L, cheb_m=M)
        grid_spec = pltpu.PrefetchScalarGridSpec(
            num_scalar_prefetch=0,
            grid=(B // TB, L),                       # layer axis last ('arbitrary')
            in_specs=[
                pl.BlockSpec((TB, INP), lambda i, l: (i, 0)),         # x (per batch tile)
                pl.BlockSpec((1, INP, INP), lambda i, l: (l, 0, 0)),  # layer-l weight
                pl.BlockSpec((1, 1, INP), lambda i, l: (l, 0, 0)),    # layer-l bias
                pl.BlockSpec(memory_space=pltpu.MemorySpace.SMEM),    # cheb coeffs
                wspec((INP, OUT), lambda i, l: (0, 0)),               # final weight
                wspec((1, OUT), lambda i, l: (0, 0)),                 # final bias
            ],
            out_specs=pl.BlockSpec((TB, OUT), lambda i, l: (i, 0)),
            scratch_shapes=[pltpu.VMEM((TB, INP), jnp.bfloat16)],     # activation carry
        )
        dim_sem = ("parallel", "arbitrary")

    return pl.pallas_call(
        kernel,
        out_shape=out_shape,
        grid_spec=grid_spec,
        compiler_params=pltpu.CompilerParams(dimension_semantics=dim_sem, **cp_kwargs),
        cost_estimate=cost,
    )(x, w_hidden, b_hidden, cheb_flat, w_out, b_out)


# ---------------------------------------------------------------------------
# Pure-JAX fp32 reference (true fp32 activation path; weights upcast from storage).
# ---------------------------------------------------------------------------

def _reference_fp32(x, w_hidden, b_hidden, cheb_coeffs, w_out, b_out):
    L, M = cheb_coeffs.shape
    hi = jax.lax.Precision.HIGHEST
    h = x.astype(jnp.float32)
    for l in range(L):
        h = jnp.dot(h, w_hidden[l].astype(jnp.float32), precision=hi) + b_hidden[l, 0]
        c = cheb_coeffs[l]
        t_prev = jnp.ones_like(h)
        acc = c[0] * t_prev
        if M > 1:
            t_cur = h
            acc = acc + c[1] * t_cur
            for m in range(2, M):
                t_next = 2.0 * h * t_cur - t_prev
                acc = acc + c[m] * t_next
                t_prev, t_cur = t_cur, t_next
        h = acc
    return jnp.dot(h, w_out.astype(jnp.float32), precision=hi) + b_out[0]


if __name__ == "__main__":
    # Small, lane-dense shapes (feature dims multiples of 128).
    B, INP, OUT = 128, 256, 128      # batch, inp_size, outp_size
    L, M = 2, 3                      # hidden_layers, chebyshev_M

    key = jax.random.PRNGKey(0)
    kx, kw, kb, kc, kwo, kbo = jax.random.split(key, 6)

    x = jax.random.normal(kx, (B, INP), dtype=jnp.float32)
    # Linear weights stored pre-transposed (in, out) and in bf16 (MXU-friendly).
    w_hidden = (0.04 * jax.random.normal(kw, (L, INP, INP), dtype=jnp.float32)
                ).astype(jnp.bfloat16)
    b_hidden = 0.1 * jax.random.normal(kb, (L, 1, INP), dtype=jnp.float32)
    cheb_coeffs = 0.2 * jax.random.normal(kc, (L, M), dtype=jnp.float32)
    w_out = (0.04 * jax.random.normal(kwo, (INP, OUT), dtype=jnp.float32)
             ).astype(jnp.bfloat16)
    b_out = 0.1 * jax.random.normal(kbo, (1, OUT), dtype=jnp.float32)

    fwd = jax.jit(mixed1_forward, static_argnames=("tile_b", "layer_stream"))

    # Default (auto) path: weight-resident at these sizes.
    out_resident = jax.block_until_ready(
        fwd(x, w_hidden, b_hidden, cheb_coeffs, w_out, b_out, layer_stream=False))
    # Also exercise the layer-streaming path (used automatically when L*INP^2 is large).
    out_stream = jax.block_until_ready(
        fwd(x, w_hidden, b_hidden, cheb_coeffs, w_out, b_out, layer_stream=True))

    ref = _reference_fp32(x, w_hidden, b_hidden, cheb_coeffs, w_out, b_out)
    assert out_resident.shape == (B, OUT), out_resident.shape
    assert out_stream.shape == (B, OUT), out_stream.shape

    scale = float(jnp.max(jnp.abs(ref))) + 1.0
    err_resident = float(jnp.max(jnp.abs(out_resident - ref)))
    err_stream = float(jnp.max(jnp.abs(out_stream - ref)))
    err_paths = float(jnp.max(jnp.abs(out_resident - out_stream)))
    # Kernel uses bf16 matmul inputs / bf16 inter-layer activations (fp32 accumulation);
    # validate against the true fp32 reference with a bf16-appropriate tolerance.
    assert err_resident / scale < 3e-2, ("resident path", err_resident, scale)
    assert err_stream / scale < 3e-2, ("layer-stream path", err_stream, scale)
    assert err_paths / scale < 1e-3, ("path mismatch", err_paths, scale)

    print("KERNEL_OK")
</pallas_src>

<mosaic_0001>
module attributes {stable_mosaic.version = 11 : i64} {
  func.func @_mixed1_resident_kernel(%arg0: i32, %arg1: memref<128x256xbf16, #tpu.memory_space<vmem>>, %arg2: memref<2x256x256xbf16, #tpu.memory_space<vmem>>, %arg3: memref<2x1x256xf32, #tpu.memory_space<vmem>>, %arg4: memref<6xf32, #tpu.memory_space<smem>>, %arg5: memref<256x128xbf16, #tpu.memory_space<vmem>>, %arg6: memref<1x128xf32, #tpu.memory_space<vmem>>, %arg7: memref<128x128xf32, #tpu.memory_space<vmem>>) attributes {dimension_semantics = [#tpu.dimension_semantics<parallel>], iteration_bounds = array<i64: 1>, scalar_prefetch = 0 : i64, scratch_operands = 0 : i64, tpu.core_type = #tpu.core_type<tc>, window_params = [{transform_indices = @transform_0, window_bounds = array<i64: 128, 256>}, {pipeline_mode = #tpu.pipeline_mode<synchronous>, transform_indices = @transform_1, window_bounds = array<i64: 2, 256, 256>}, {pipeline_mode = #tpu.pipeline_mode<synchronous>, transform_indices = @transform_2, window_bounds = array<i64: 2, 1, 256>}, {transform_indices = @transform_3, window_bounds = array<i64: 6>}, {pipeline_mode = #tpu.pipeline_mode<synchronous>, transform_indices = @transform_4, window_bounds = array<i64: 256, 128>}, {pipeline_mode = #tpu.pipeline_mode<synchronous>, transform_indices = @transform_5, window_bounds = array<i64: 1, 128>}, {transform_indices = @transform_6, window_bounds = array<i64: 128, 128>}]} {
    %c0 = arith.constant 0 : index
    %c0_0 = arith.constant 0 : index
    %0 = vector.load %arg1[%c0, %c0_0] : memref<128x256xbf16, #tpu.memory_space<vmem>>, vector<128x256xbf16>
    %c0_1 = arith.constant 0 : index
    %c0_2 = arith.constant 0 : index
    %c0_3 = arith.constant 0 : index
    %1 = vector.load %arg2[%c0_1, %c0_2, %c0_3] : memref<2x256x256xbf16, #tpu.memory_space<vmem>>, vector<1x256x256xbf16>
    %2 = vector.shape_cast %1 : vector<1x256x256xbf16> to vector<256x256xbf16>
    %cst = arith.constant dense<0.000000e+00> : vector<128x256xf32>
    %3 = tpu.matmul %0, %2, %cst {dimension_numbers = #tpu.dot_dimension_numbers<[1], [0], [0], [1], [0, 0, 1, 1], [], []>} : vector<128x256xbf16>, vector<256x256xbf16>, vector<128x256xf32> -> vector<128x256xf32>
    %c0_4 = arith.constant 0 : index
    %c0_5 = arith.constant 0 : index
    %c0_6 = arith.constant 0 : index
    %4 = vector.load %arg3[%c0_4, %c0_5, %c0_6] : memref<2x1x256xf32, #tpu.memory_space<vmem>>, vector<1x1x256xf32>
    %5 = vector.shape_cast %4 : vector<1x1x256xf32> to vector<1x256xf32>
    %6 = vector.broadcast %5 : vector<1x256xf32> to vector<128x256xf32>
    %7 = arith.addf %3, %6 : vector<128x256xf32>
    %c0_7 = arith.constant 0 : index
    %8 = memref.load %arg4[%c0_7] : memref<6xf32, #tpu.memory_space<smem>>
    %c1 = arith.constant 1 : index
    %9 = memref.load %arg4[%c1] : memref<6xf32, #tpu.memory_space<smem>>
    %c2 = arith.constant 2 : index
    %10 = memref.load %arg4[%c2] : memref<6xf32, #tpu.memory_space<smem>>
    %cst_8 = arith.constant -1.000000e+00 : f32
    %11 = arith.mulf %10, %cst_8 : f32
    %12 = arith.addf %8, %11 : f32
    %cst_9 = arith.constant 2.000000e+00 : f32
    %13 = arith.mulf %10, %cst_9 : f32
    %14 = vector.broadcast %13 : f32 to vector<128x256xf32>
    %15 = arith.mulf %14, %7 : vector<128x256xf32>
    %16 = vector.broadcast %9 : f32 to vector<128x256xf32>
    %17 = arith.addf %15, %16 : vector<128x256xf32>
    %18 = arith.mulf %17, %7 : vector<128x256xf32>
    %19 = vector.broadcast %12 : f32 to vector<128x256xf32>
    %20 = arith.addf %18, %19 : vector<128x256xf32>
    %21 = arith.truncf %20 : vector<128x256xf32> to vector<128x256xbf16>
    %c1_10 = arith.constant 1 : index
    %c0_11 = arith.constant 0 : index
    %c0_12 = arith.constant 0 : index
    %22 = vector.load %arg2[%c1_10, %c0_11, %c0_12] : memref<2x256x256xbf16, #tpu.memory_space<vmem>>, vector<1x256x256xbf16>
    %23 = vector.shape_cast %22 : vector<1x256x256xbf16> to vector<256x256xbf16>
    %cst_13 = arith.constant dense<0.000000e+00> : vector<128x256xf32>
    %24 = tpu.matmul %21, %23, %cst_13 {dimension_numbers = #tpu.dot_dimension_numbers<[1], [0], [0], [1], [0, 0, 1, 1], [], []>} : vector<128x256xbf16>, vector<256x256xbf16>, vector<128x256xf32> -> vector<128x256xf32>
    %c1_14 = arith.constant 1 : index
    %c0_15 = arith.constant 0 : index
    %c0_16 = arith.constant 0 : index
    %25 = vector.load %arg3[%c1_14, %c0_15, %c0_16] : memref<2x1x256xf32, #tpu.memory_space<vmem>>, vector<1x1x256xf32>
    %26 = vector.shape_cast %25 : vector<1x1x256xf32> to vector<1x256xf32>
    %27 = vector.broadcast %26 : vector<1x256xf32> to vector<128x256xf32>
    %28 = arith.addf %24, %27 : vector<128x256xf32>
    %c3 = arith.constant 3 : index
    %29 = memref.load %arg4[%c3] : memref<6xf32, #tpu.memory_space<smem>>
    %c4 = arith.constant 4 : index
    %30 = memref.load %arg4[%c4] : memref<6xf32, #tpu.memory_space<smem>>
    %c5 = arith.constant 5 : index
    %31 = memref.load %arg4[%c5] : memref<6xf32, #tpu.memory_space<smem>>
    %cst_17 = arith.constant -1.000000e+00 : f32
    %32 = arith.mulf %31, %cst_17 : f32
    %33 = arith.addf %29, %32 : f32
    %cst_18 = arith.constant 2.000000e+00 : f32
    %34 = arith.mulf %31, %cst_18 : f32
    %35 = vector.broadcast %34 : f32 to vector<128x256xf32>
    %36 = arith.mulf %35, %28 : vector<128x256xf32>
    %37 = vector.broadcast %30 : f32 to vector<128x256xf32>
    %38 = arith.addf %36, %37 : vector<128x256xf32>
    %39 = arith.mulf %38, %28 : vector<128x256xf32>
    %40 = vector.broadcast %33 : f32 to vector<128x256xf32>
    %41 = arith.addf %39, %40 : vector<128x256xf32>
    %42 = arith.truncf %41 : vector<128x256xf32> to vector<128x256xbf16>
    %c0_19 = arith.constant 0 : index
    %c0_20 = arith.constant 0 : index
    %43 = vector.load %arg5[%c0_19, %c0_20] : memref<256x128xbf16, #tpu.memory_space<vmem>>, vector<256x128xbf16>
    %cst_21 = arith.constant dense<0.000000e+00> : vector<128x128xf32>
    %44 = tpu.matmul %42, %43, %cst_21 {dimension_numbers = #tpu.dot_dimension_numbers<[1], [0], [0], [1], [0, 0, 1, 1], [], []>} : vector<128x256xbf16>, vector<256x128xbf16>, vector<128x128xf32> -> vector<128x128xf32>
    %c0_22 = arith.constant 0 : index
    %c0_23 = arith.constant 0 : index
    %45 = vector.load %arg6[%c0_22, %c0_23] : memref<1x128xf32, #tpu.memory_space<vmem>>, vector<1x128xf32>
    %46 = vector.broadcast %45 : vector<1x128xf32> to vector<128x128xf32>
    %47 = arith.addf %44, %46 : vector<128x128xf32>
    %c0_24 = arith.constant 0 : index
    %c0_25 = arith.constant 0 : index
    %48 = vector.load %arg7[%c0_24, %c0_25] : memref<128x128xf32, #tpu.memory_space<vmem>>, vector<128x128xf32>
    tpu.vector_store %arg7[%c0_24, %c0_25], %47 {strides = array<i32>} : memref<128x128xf32, #tpu.memory_space<vmem>>, vector<128x128xf32>,
    return
  }
  func.func @transform_0(%arg0: i32) -> (i32, i32) {
    %c0_i32 = arith.constant 0 : i32
    %c0_i32_0 = arith.constant 0 : i32
    return %arg0, %c0_i32 : i32, i32
  }
  func.func @transform_1(%arg0: i32) -> (i32, i32, i32) {
    %c0_i32 = arith.constant 0 : i32
    %c0_i32_0 = arith.constant 0 : i32
    %c0_i32_1 = arith.constant 0 : i32
    %c0_i32_2 = arith.constant 0 : i32
    return %c0_i32, %c0_i32_0, %c0_i32_1 : i32, i32, i32
  }
  func.func @transform_2(%arg0: i32) -> (i32, i32, i32) {
    %c0_i32 = arith.constant 0 : i32
    %c0_i32_0 = arith.constant 0 : i32
    %c0_i32_1 = arith.constant 0 : i32
    %c0_i32_2 = arith.constant 0 : i32
    return %c0_i32, %c0_i32_0, %c0_i32_1 : i32, i32, i32
  }
  func.func @transform_3(%arg0: i32) -> i32 {
    %c0_i32 = arith.constant 0 : i32
    %c0_i32_0 = arith.constant 0 : i32
    return %c0_i32 : i32
  }
  func.func @transform_4(%arg0: i32) -> (i32, i32) {
    %c0_i32 = arith.constant 0 : i32
    %c0_i32_0 = arith.constant 0 : i32
    %c0_i32_1 = arith.constant 0 : i32
    return %c0_i32, %c0_i32_0 : i32, i32
  }
  func.func @transform_5(%arg0: i32) -> (i32, i32) {
    %c0_i32 = arith.constant 0 : i32
    %c0_i32_0 = arith.constant 0 : i32
    %c0_i32_1 = arith.constant 0 : i32
    return %c0_i32, %c0_i32_0 : i32, i32
  }
  func.func @transform_6(%arg0: i32) -> (i32, i32) {
    %c0_i32 = arith.constant 0 : i32
    %c0_i32_0 = arith.constant 0 : i32
    return %arg0, %c0_i32 : i32, i32
  }
}

</mosaic_0001>

<bundles_post_ra>
// kernel: mixed1_forward.1
= control target key start
LH: loop header
LB: loop body
LE: loop exit
PB: predicated region body
PF: predicated region fallthrough
CT: control target
= control target key end

     0   :  { %11 = vsyncpa [#allocation3], 0  ;;  %s2254_s0 = inlined_call_operand.vmem [shape: bf16[128,256], index: 0, kind: input, shape index: {}]   ;;  %s2255_s1 = inlined_call_operand.hbm [shape: bf16[2,256,256], index: 1, kind: input, shape index: {}]   ;;  %s2256_s2 = inlined_call_operand.vmem [shape: f32[2,1,256], index: 2, kind: input, shape index: {}]   ;;  %s2257_s3 = inlined_call_operand.vmem [shape: f32[6], index: 3, kind: input, shape index: {}]   ;;  %s2258_s4 = inlined_call_operand.vmem [shape: bf16[256,128], index: 4, kind: input, shape index: {}]   ;;  %s2259_s5 = inlined_call_operand.vmem [shape: f32[1,128], index: 5, kind: input, shape index: {}]   ;;  %s2260_s6 = inlined_call_operand.hbm [shape: f32[128,128], index: 6, kind: output, shape index: {}]  }
   0x1   :  { %12 = vsyncpa [#allocation5], 0 }
   0x2   :  { %13 = vsyncpa [#allocation4], 0  ;;  %s1742_s21 = smov [#allocation2]   ;;  %s36_s25 = sshll.u32 %s2257_s3, 4  ;;  %s37_s25 = int_to_ptr.vmem [resolvable:$true] %s36_s25 }
   0x3   :  { %s21_s22 = sshll.u32 %s1742_s21, 4  ;;  %s1680_s28 = scalar_lea.hbm %s2255_s1, 8192  ;;  %s22_s22 = int_to_ptr.vmem [resolvable:$true] %s21_s22 }
   0x4   :  { %p1681_p0 = scmp.ne.s32.totalorder %s2255_s1, %s1680_s28  ;;  %p1684_p1 = scmp.lt.u32.totalorder %s1680_s28, %s2255_s1 }
   0x6   :  { %p1686_p2 = pnand %p1684_p1, %p1681_p0 }
   0x8   :  { %1689 = shalt.err (!%p1686_p2)
}
   0x9   :  { %s1690_s9 = scalar_lea.vmem %s22_s22, 8192  ;;  %p1695_p4 = scmp.lt.s32.totalorder %s22_s22, %s22_s22 }
   0xa   :  { %p1691_p3 = scmp.ne.s32.totalorder %s22_s22, %s1690_s9  ;;  %p1696_p5 = scmp.lt.s32.totalorder %s1690_s9, %s1690_s9 }
   0xc   :  { %p1697_p6 = por %p1696_p5, %p1695_p4 }
   0xe   :  { %p1698_p7 = pnand %p1697_p6, %p1691_p3 }
  0x10   :  { %1701 = shalt.err (!%p1698_p7)
}
  0x11   :  { %s1743_s3 = smov 128   ;;  %s1744_s10 = smov 8  }
  0x12   :  { %27 = dma.hbm_to_vmem [thread:$0]  %s2255_s1, 8192, %s22_s22, [#allocation3], %s1743_s3, %s1743_s3, %s1744_s10  }
  0x13   :  { %s1702_s13 = scalar_lea.vmem %s37_s25, 16  ;;  %p1707_p9 = scmp.lt.s32.totalorder %s37_s25, %s37_s25 }
  0x14   :  { %p1703_p8 = scmp.ne.s32.totalorder %s37_s25, %s1702_s13  ;;  %p1708_p10 = scmp.lt.s32.totalorder %s1702_s13, %s1702_s13 }
  0x16   :  { %p1709_p11 = por %p1708_p10, %p1707_p9 }
  0x18   :  { %p1710_p12 = pnand %p1709_p11, %p1703_p8 }
  0x1a   :  { %1713 = shalt.err (!%p1710_p12)
}
  0x1b   :  { %s1745_s14 = smov [#allocation6]  }
  0x1c   :  { %39 = dma.vmem_to_smem %s37_s25, 16, %s1745_s14, [#allocation5]  }
  0x1d   :  { %1736 = dma.done.wait [#allocation3], 8192  }
  0x1e   :  { %1737 = vsyncadd [#allocation3], 4294959104 }
  0x1f   :  { %1738 = dma.done.wait [#allocation5], 16  }
  0x20   :  { %1739 = vsyncadd [#allocation5], 4294967280 }
  0x21   :  { %50 = sfence }
  0x22   :  { %v1544_v0 = vld [vmem:[#allocation2 + $0x4] ss:$8 sps:$4 sm:$0xff]   ;;  %v1546_v1 = vld [vmem:[#allocation2] ss:$8 sps:$4 sm:$0xff]   ;;  %v1547_v2 = vld [vmem:[#allocation2 + $0x14] ss:$8 sps:$4 sm:$0xff]  }
  0x23   :  { %352 = vmatprep.subr.bf16.mxu0 %v1544_v0  ;;  %v1549_v3 = vld [vmem:[#allocation2 + $0x10] ss:$8 sps:$4 sm:$0xff]   ;;  %v1550_v4 = vld [vmem:[#allocation2 + $0x24] ss:$8 sps:$4 sm:$0xff]   ;;  %v1552_v5 = vld [vmem:[#allocation2 + $0x20] ss:$8 sps:$4 sm:$0xff]  }
  0x24   :  { %353 = vmatpush1.bf16.msra.mxu0 %v1546_v1  ;;  %v1553_v6 = vld [vmem:[#allocation2 + $0x34] ss:$8 sps:$4 sm:$0xff]   ;;  %v1555_v7 = vld [vmem:[#allocation2 + $0x30] ss:$8 sps:$4 sm:$0xff]   ;;  %v1556_v8 = vld [vmem:[#allocation2 + $0x44] ss:$8 sps:$4 sm:$0xff]  }
  0x25   :  { %354 = vmatprep.subr.bf16.mxu0 %v1547_v2  ;;  %v1558_v9 = vld [vmem:[#allocation2 + $0x40] ss:$8 sps:$4 sm:$0xff]   ;;  %v1559_v10 = vld [vmem:[#allocation2 + $0x54] ss:$8 sps:$4 sm:$0xff]   ;;  %v1561_v11 = vld [vmem:[#allocation2 + $0x50] ss:$8 sps:$4 sm:$0xff]  }
  0x26   :  { %v1562_v12 = vld [vmem:[#allocation2 + $0x64] ss:$8 sps:$4 sm:$0xff]   ;;  %v1564_v14 = vld [vmem:[#allocation2 + $0x60] ss:$8 sps:$4 sm:$0xff]   ;;  %v1565_v15 = vld [vmem:[#allocation2 + $0x74] ss:$8 sps:$4 sm:$0xff]  }
  0x27   :  { %v1594_v13 = vld [vmem:[%s2254_s0 + $0x4] ss:$8 sps:$4 sm:$0xff]   ;;  %v1567_v16 = vld [vmem:[#allocation2 + $0x70] ss:$8 sps:$4 sm:$0xff]   ;;  %v1570_v18 = vld [vmem:[#allocation2 + $0x80] ss:$8 sps:$4 sm:$0xff]  }
  0x28   :  { %355 = vmatpush1.bf16.msra.mxu0 %v1549_v3  ;;  %384 = vmatprep.mubr.bf16.mxu0 %v1594_v13  ;;  %v1568_v17 = vld [vmem:[#allocation2 + $0x84] ss:$8 sps:$4 sm:$0xff]   ;;  %v1571_v19 = vld [vmem:[#allocation2 + $0x94] ss:$8 sps:$4 sm:$0xff]   ;;  %v1618_v21 = vld [vmem:[#allocation2 + $0x100] ss:$8 sps:$4 sm:$0xff]  }
  0x29   :  { %356 = vmatprep.subr.bf16.mxu0 %v1550_v4  ;;  %v1616_v20 = vld [vmem:[#allocation2 + $0x104] ss:$8 sps:$4 sm:$0xff]   ;;  %v1573_v22 = vld [vmem:[#allocation2 + $0x90] ss:$8 sps:$4 sm:$0xff]   ;;  %v1619_v23 = vld [vmem:[#allocation2 + $0x114] ss:$8 sps:$4 sm:$0xff]  }
  0x2a   :  { %824 = vmatprep.subr.bf16.mxu1 %v1616_v20  ;;  %v1574_v24 = vld [vmem:[#allocation2 + $0xa4] ss:$8 sps:$4 sm:$0xff]   ;;  %v1621_v25 = vld [vmem:[#allocation2 + $0x110] ss:$8 sps:$4 sm:$0xff]   ;;  %v1576_v27 = vld [vmem:[#allocation2 + $0xa0] ss:$8 sps:$4 sm:$0xff]  }
  0x2b   :  { %825 = vmatpush1.bf16.msra.mxu1 %v1618_v21  ;;  %v1622_v26 = vld [vmem:[#allocation2 + $0x124] ss:$8 sps:$4 sm:$0xff]   ;;  %v1577_v28 = vld [vmem:[#allocation2 + $0xb4] ss:$8 sps:$4 sm:$0xff]   ;;  %v1624_v29 = vld [vmem:[#allocation2 + $0x120] ss:$8 sps:$4 sm:$0xff]  }
  0x2c   :  { %357 = vmatpush1.bf16.msra.mxu0 %v1552_v5  ;;  %826 = vmatprep.subr.bf16.mxu1 %v1619_v23  ;;  %v1625_v30 = vld [vmem:[#allocation2 + $0x134] ss:$8 sps:$4 sm:$0xff]   ;;  %v1579_v31 = vld [vmem:[#allocation2 + $0xb0] ss:$8 sps:$4 sm:$0xff]   ;;  %v1580_v32 = vld [vmem:[#allocation2 + $0xc4] ss:$8 sps:$4 sm:$0xff]  }
  0x2d   :  { %358 = vmatprep.subr.bf16.mxu0 %v1553_v6  ;;  %v1627_v33 = vld [vmem:[#allocation2 + $0x130] ss:$8 sps:$4 sm:$0xff]   ;;  %v1628_v34 = vld [vmem:[#allocation2 + $0x144] ss:$8 sps:$4 sm:$0xff]   ;;  %v1582_v35 = vld [vmem:[#allocation2 + $0xc0] ss:$8 sps:$4 sm:$0xff]  }
  0x2e   :  { %v1583_v36 = vld [vmem:[#allocation2 + $0xd4] ss:$8 sps:$4 sm:$0xff]   ;;  %v1630_v37 = vld [vmem:[#allocation2 + $0x140] ss:$8 sps:$4 sm:$0xff]   ;;  %v1585_v39 = vld [vmem:[#allocation2 + $0xd0] ss:$8 sps:$4 sm:$0xff]  }
  0x2f   :  { %827 = vmatpush1.bf16.msra.mxu1 %v1621_v25  ;;  %v1631_v38 = vld [vmem:[#allocation2 + $0x154] ss:$8 sps:$4 sm:$0xff]   ;;  %v1633_v40 = vld [vmem:[#allocation2 + $0x150] ss:$8 sps:$4 sm:$0xff]   ;;  %v1586_v41 = vld [vmem:[#allocation2 + $0xe4] ss:$8 sps:$4 sm:$0xff]  }
  0x30   :  { %359 = vmatpush1.bf16.msra.mxu0 %v1555_v7  ;;  %828 = vmatprep.subr.bf16.mxu1 %v1622_v26  ;;  %v1634_v42 = vld [vmem:[#allocation2 + $0x164] ss:$8 sps:$4 sm:$0xff]   ;;  %v1588_v43 = vld [vmem:[#allocation2 + $0xe0] ss:$8 sps:$4 sm:$0xff]   ;;  %v1589_v45 = vld [vmem:[#allocation2 + $0xf4] ss:$8 sps:$4 sm:$0xff]  }
  0x31   :  { %360 = vmatprep.subr.bf16.mxu0 %v1556_v8  ;;  %v1636_v44 = vld [vmem:[#allocation2 + $0x160] ss:$8 sps:$4 sm:$0xff]   ;;  %v1637_v46 = vld [vmem:[#allocation2 + $0x174] ss:$8 sps:$4 sm:$0xff]   ;;  %v1591_v47 = vld [vmem:[#allocation2 + $0xf0] ss:$8 sps:$4 sm:$0xff]  }
  0x32   :  { %v1639_v48 = vld [vmem:[#allocation2 + $0x170] ss:$8 sps:$4 sm:$0xff]   ;;  %v1640_v49 = vld [vmem:[#allocation2 + $0x184] ss:$8 sps:$4 sm:$0xff]   ;;  %v1592_v50 = vld [vmem:[%s2254_s0] ss:$8 sps:$4 sm:$0xff]  }
  0x33   :  { %829 = vmatpush1.bf16.msra.mxu1 %v1624_v29  ;;  %v1595_v51 = vld [vmem:[%s2254_s0 + $0x14] ss:$8 sps:$4 sm:$0xff]   ;;  %v1642_v52 = vld [vmem:[#allocation2 + $0x180] ss:$8 sps:$4 sm:$0xff]   ;;  %v1645_v54 = vld [vmem:[#allocation2 + $0x190] ss:$8 sps:$4 sm:$0xff]  }
  0x34   :  { %361 = vmatpush1.bf16.msra.mxu0 %v1558_v9  ;;  %830 = vmatprep.subr.bf16.mxu1 %v1625_v30  ;;  %v1643_v53 = vld [vmem:[#allocation2 + $0x194] ss:$8 sps:$4 sm:$0xff]   ;;  %v1646_v55 = vld [vmem:[#allocation2 + $0x1a4] ss:$8 sps:$4 sm:$0xff]   ;;  %v1597_v56 = vld [vmem:[%s2254_s0 + $0x10] ss:$8 sps:$4 sm:$0xff]  }
  0x35   :  { %362 = vmatprep.subr.bf16.mxu0 %v1559_v10  ;;  %v1598_v57 = vld [vmem:[%s2254_s0 + $0x24] ss:$8 sps:$4 sm:$0xff]   ;;  %v1648_v58 = vld [vmem:[#allocation2 + $0x1a0] ss:$8 sps:$4 sm:$0xff]   ;;  %v1649_v59 = vld [vmem:[#allocation2 + $0x1b4] ss:$8 sps:$4 sm:$0xff]  }
  0x36   :  { %v1651_v60 = vld [vmem:[#allocation2 + $0x1b0] ss:$8 sps:$4 sm:$0xff]   ;;  %v1600_v61 = vld [vmem:[%s2254_s0 + $0x20] ss:$8 sps:$4 sm:$0xff]   ;;  %v1601_v62 = vld [vmem:[%s2254_s0 + $0x34] ss:$8 sps:$4 sm:$0xff]  }
  0x37   :  { %831 = vmatpush1.bf16.msra.mxu1 %v1627_v33  ;;  %v1603_v63 = vld [vmem:[%s2254_s0 + $0x30] ss:$8 sps:$4 sm:$0xff]   ;;  %v1604_v0 = vld [vmem:[%s2254_s0 + $0x44] ss:$8 sps:$4 sm:$0xff]   ;;  %v1606_v1 = vld [vmem:[%s2254_s0 + $0x40] ss:$8 sps:$4 sm:$0xff]  }
  0x38   :  { %363 = vmatpush1.bf16.msra.mxu0 %v1561_v11  ;;  %832 = vmatprep.subr.bf16.mxu1 %v1628_v34  ;;  %v1607_v2 = vld [vmem:[%s2254_s0 + $0x54] ss:$8 sps:$4 sm:$0xff]   ;;  %v1609_v3 = vld [vmem:[%s2254_s0 + $0x50] ss:$8 sps:$4 sm:$0xff]   ;;  %v1610_v4 = vld [vmem:[%s2254_s0 + $0x64] ss:$8 sps:$4 sm:$0xff]  }
  0x39   :  { %364 = vmatprep.subr.bf16.mxu0 %v1562_v12  ;;  %v1612_v5 = vld [vmem:[%s2254_s0 + $0x60] ss:$8 sps:$4 sm:$0xff]   ;;  %v1613_v6 = vld [vmem:[%s2254_s0 + $0x74] ss:$8 sps:$4 sm:$0xff]   ;;  %v1615_v7 = vld [vmem:[%s2254_s0 + $0x70] ss:$8 sps:$4 sm:$0xff]  }
  0x3a   :  { %v1652_v8 = vld [vmem:[#allocation2 + $0x1c4] ss:$8 sps:$4 sm:$0xff]   ;;  %v1654_v9 = vld [vmem:[#allocation2 + $0x1c0] ss:$8 sps:$4 sm:$0xff]   ;;  %v1655_v10 = vld [vmem:[#allocation2 + $0x1d4] ss:$8 sps:$4 sm:$0xff]  }
  0x3b   :  { %833 = vmatpush1.bf16.msra.mxu1 %v1630_v37  ;;  %v1657_v11 = vld [vmem:[#allocation2 + $0x1d0] ss:$8 sps:$4 sm:$0xff]   ;;  %v1658_v12 = vld [vmem:[#allocation2 + $0x1e4] ss:$8 sps:$4 sm:$0xff]   ;;  %v1660_v13 = vld [vmem:[#allocation2 + $0x1e0] ss:$8 sps:$4 sm:$0xff]  }
  0x3c   :  { %365 = vmatpush1.bf16.msra.mxu0 %v1564_v14  ;;  %834 = vmatprep.subr.bf16.mxu1 %v1631_v38  ;;  %v1661_v14 = vld [vmem:[#allocation2 + $0x1f4] ss:$8 sps:$4 sm:$0xff]   ;;  %s1405_s14 = sld [smem:[#allocation6 + $0x2]]  ;;  %s1404_s16 = sld [smem:[#allocation6 + $0x1]] }
  0x3d   :  { %366 = vmatprep.subr.bf16.mxu0 %v1565_v15  ;;  %v1663_v15 = vld [vmem:[#allocation2 + $0x1f0] ss:$8 sps:$4 sm:$0xff]   ;;  %s465_s17 = sld [smem:[#allocation6]]  ;;  %s1441_s13 = sld [smem:[#allocation6 + $0x5]] }
  0x3e   :  { %v1871_v20 = vld [vmem:[%s2258_s4 + $0x50] sm:$0xff]   ;;  %v1889_v23 = vld [vmem:[%s2258_s4 + $0x18] sm:$0xff]   ;;  %s1440_s15 = sld [smem:[#allocation6 + $0x4]] }
  0x3f   :  { %835 = vmatpush1.bf16.msra.mxu1 %v1633_v40  ;;  %v1877_v21 = vld [vmem:[%s2258_s4 + $0x10] sm:$0xff]  }
  0x40   :  { %367 = vmatpush1.bf16.msra.mxu0 %v1567_v16  ;;  %836 = vmatprep.subr.bf16.mxu1 %v1634_v42  ;;  %v1664_v16 = vld [vmem:[%s2258_s4 + $0x40] sm:$0xff]  }
  0x41   :  { %368 = vmatprep.subr.bf16.mxu0 %v1568_v17  ;;  %v1854_v17 = vld [vmem:[%s2258_s4] sm:$0xff]  }
  0x42   :  { %s470_s18 = smul.f32 2.0, %s1405_s14 }
  0x43   :  { %837 = vmatpush1.bf16.msra.mxu1 %v1636_v44  ;;  %s468_s19 = smul.f32 -1.0, %s1405_s14 }
  0x44   :  { %369 = vmatpush1.bf16.msra.mxu0 %v1570_v18  ;;  %838 = vmatprep.subr.bf16.mxu1 %v1637_v46  ;;  %v1859_v18 = vld [vmem:[%s2258_s4 + $0x48] sm:$0xff]  }
  0x45   :  { %370 = vmatprep.subr.bf16.mxu0 %v1571_v19  ;;  %v1865_v19 = vld [vmem:[%s2258_s4 + $0x8] sm:$0xff]   ;;  %s469_s20 = sadd.f32 %s468_s19, %s465_s17  ;;  %s942_s17 = smul.f32 2.0, %s1441_s13 }
  0x47   :  { %839 = vmatpush1.bf16.msra.mxu1 %v1639_v48 }
  0x48   :  { %371 = vmatpush1.bf16.msra.mxu0 %v1573_v22  ;;  %840 = vmatprep.subr.bf16.mxu1 %v1640_v49  ;;  %v1883_v22 = vld [vmem:[%s2258_s4 + $0x58] sm:$0xff]   ;;  %v1923_v49 = vstv %s469_s20 }
  0x49   :  { %372 = vmatprep.subr.bf16.mxu0 %v1574_v24  ;;  %v102_v24 = vlaneseq }
  0x4b   :  { %841 = vmatpush1.bf16.msra.mxu1 %v1642_v52  ;;  %v1893_v25 = vshrl.u32 %v102_v24, 7 }
  0x4c   :  { %373 = vmatpush1.bf16.msra.mxu0 %v1576_v27  ;;  %842 = vmatprep.subr.bf16.mxu1 %v1643_v53  ;;  %v100_v27 = vld [vmem:[%s2256_s2] sm:$0x3] }
  0x4d   :  { %374 = vmatprep.subr.bf16.mxu0 %v1577_v28  ;;  %v104_v26 = vsub.s32 0, %v1893_v25  ;;  %v108_v28 = vsub.s32 1, %v1893_v25 }
  0x4f   :  { %843 = vmatpush1.bf16.msra.mxu1 %v1645_v54  ;;  %v1902_v29 = vrot.slane %v100_v27, %v104_v26  ;;  %v1906_v30 = vrot.slane %v100_v27, %v108_v28 }
  0x50   :  { %375 = vmatpush1.bf16.msra.mxu0 %v1579_v31  ;;  %844 = vmatprep.subr.bf16.mxu1 %v1646_v55 }
  0x51   :  { %376 = vmatprep.subr.bf16.mxu0 %v1580_v32  ;;  %v1908_v32 = vstv %s470_s18 }
  0x53   :  { %845 = vmatpush1.bf16.msra.mxu1 %v1648_v58 }
  0x54   :  { %377 = vmatpush1.bf16.msra.mxu0 %v1582_v35  ;;  %846 = vmatprep.subr.bf16.mxu1 %v1649_v59  ;;  %v1911_v35 = vstv %s1404_s16  ;;  %s1439_s16 = sld [smem:[#allocation6 + $0x3]] }
  0x55   :  { %378 = vmatprep.subr.bf16.mxu0 %v1583_v36 }
  0x57   :  { %847 = vmatpush1.bf16.msra.mxu1 %v1651_v60 }
  0x58   :  { %379 = vmatpush1.bf16.msra.mxu0 %v1585_v39  ;;  %848 = vmatprep.subr.bf16.mxu1 %v1652_v8 }
  0x59   :  { %380 = vmatprep.subr.bf16.mxu0 %v1586_v41 }
  0x5b   :  { %849 = vmatpush1.bf16.msra.mxu1 %v1654_v9 }
  0x5c   :  { %381 = vmatpush1.bf16.msra.mxu0 %v1588_v43  ;;  %850 = vmatprep.subr.bf16.mxu1 %v1655_v10 }
  0x5d   :  { %382 = vmatprep.subr.bf16.mxu0 %v1589_v45 }
  0x5f   :  { %851 = vmatpush1.bf16.msra.mxu1 %v1657_v11 }
  0x60   :  { %383 = vmatpush1.bf16.msra.mxu0 %v1591_v47  ;;  %852 = vmatprep.subr.bf16.mxu1 %v1658_v12 }
  0x61   :  { %1459 = vmatprep.subr.bf16.mxu0 %v1664_v16 }
  0x63   :  { %385 = vmatmul.mubr.bf16.vlgmr.msra.gmra.mrb[0].mxu0 %v1592_v50  ;;  %853 = vmatpush1.bf16.msra.mxu1 %v1660_v13 }
  0x64   :  { %394 = vmatprep.mubr.bf16.mxu0 %v1595_v51  ;;  %854 = vmatprep.subr.bf16.mxu1 %v1661_v14 }
  0x65   :  { %1460 = vmatpush3.bf16.msra.mxu0 %v1854_v17 }
  0x66   :  { %1461 = vmatprep.subr.bf16.mxu0 %v1859_v18 }
  0x67   :  { %855 = vmatpush1.bf16.msra.mxu1 %v1663_v15 }
  0x68   :  { %1523 = vmatprep.subr.bf16.mxu1 %v1664_v16 }
  0x69   :  { %1462 = vmatpush3.bf16.msra.mxu0 %v1865_v19 }
  0x6a   :  { %1463 = vmatprep.subr.bf16.mxu0 %v1871_v20 }
  0x6b   :  { %395 = vmatmul.mubr.bf16.gmra.mrb[4].mxu0 %v1597_v56 }
  0x6c   :  { %404 = vmatprep.mubr.bf16.mxu0 %v1598_v57 }
  0x6d   :  { %1464 = vmatpush3.bf16.msra.mxu0 %v1877_v21 }
  0x6e   :  { %1465 = vmatprep.subr.bf16.mxu0 %v1883_v22 }
  0x71   :  { %1466 = vmatpush3.bf16.msra.mxu0 %v1889_v23 }
  0x73   :  { %405 = vmatmul.mubr.bf16.gmra.mrb[8].mxu0 %v1600_v61 }
  0x74   :  { %414 = vmatprep.mubr.bf16.mxu0 %v1601_v62 }
  0x7b   :  { %415 = vmatmul.mubr.bf16.gmra.mrb[12].mxu0 %v1603_v63 }
  0x7c   :  { %424 = vmatprep.mubr.bf16.mxu0 %v1604_v0 }
  0x83   :  { %425 = vmatmul.mubr.bf16.gmra.mrb[16].mxu0 %v1606_v1 }
  0x84   :  { %434 = vmatprep.mubr.bf16.mxu0 %v1607_v2 }
  0x8b   :  { %435 = vmatmul.mubr.bf16.gmra.mrb[20].mxu0 %v1609_v3 }
  0x8c   :  { %444 = vmatprep.mubr.bf16.mxu0 %v1610_v4 }
  0x93   :  { %445 = vmatmul.mubr.bf16.gmra.mrb[24].mxu0 %v1612_v5 }
  0x94   :  { %454 = vmatprep.mubr.bf16.mxu0 %v1613_v6 }
  0x9b   :  { %455 = vmatmul.mubr.bf16.gmra.mrb[28].mxu0 %v1615_v7 }
 0x136   :  { %v386_v31 = vpop.f32.mrb[0].mxu0 }
 0x137   :  { %v387_v33 = vadd.f32 %v386_v31, %v1902_v29  ;;  %v388_v34 = vpop.f32.mrb[1].mxu0 }
 0x138   :  { %v389_v36 = vadd.f32 %v388_v34, %v1906_v30  ;;  %v390_v37 = vpop.f32.mrb[2].mxu0 }
 0x139   :  { %v472_v38 = vmul.f32 %v1908_v32, %v387_v33  ;;  %v391_v39 = vadd.f32 %v390_v37, %v1902_v29  ;;  %v392_v40 = vpop.f32.mrb[3].mxu0 }
 0x13a   :  { %v473_v41 = vmul.f32 %v1908_v32, %v389_v36  ;;  %v393_v42 = vadd.f32 %v392_v40, %v1906_v30 }
 0x13b   :  { %v505_v43 = vadd.f32 %v1911_v35, %v472_v38  ;;  %v474_v44 = vmul.f32 %v1908_v32, %v391_v39 }
 0x13c   :  { %v506_v45 = vadd.f32 %v1911_v35, %v473_v41  ;;  %v475_v46 = vmul.f32 %v1908_v32, %v393_v42 }
 0x13d   :  { %v537_v47 = vmul.f32 %v505_v43, %v387_v33  ;;  %v507_v48 = vadd.f32 %v1911_v35, %v474_v44 }
 0x13e   :  { %v538_v50 = vmul.f32 %v506_v45, %v389_v36  ;;  %v508_v51 = vadd.f32 %v1911_v35, %v475_v46  ;;  %v396_v52 = vpop.f32.mrb[4].mxu0 }
 0x13f   :  { %v539_v53 = vmul.f32 %v507_v48, %v391_v39  ;;  %v397_v54 = vadd.f32 %v396_v52, %v1902_v29  ;;  %v398_v55 = vpop.f32.mrb[5].mxu0  ;;  %v570_v59 = vadd.f32 %v1923_v49, %v537_v47 }
 0x140   :  { %v540_v56 = vmul.f32 %v508_v51, %v393_v42  ;;  %v399_v57 = vadd.f32 %v398_v55, %v1906_v30  ;;  %v400_v58 = vpop.f32.mrb[6].mxu0  ;;  %v571_v2 = vadd.f32 %v1923_v49, %v538_v50 }
 0x141   :  { %v572_v60 = vadd.f32 %v1923_v49, %v539_v53  ;;  %v476_v61 = vmul.f32 %v1908_v32, %v397_v54  ;;  %v401_v62 = vadd.f32 %v400_v58, %v1902_v29  ;;  %v402_v63 = vpop.f32.mrb[7].mxu0 }
 0x142   :  { %v477_v0 = vmul.f32 %v1908_v32, %v399_v57  ;;  %v403_v1 = vadd.f32 %v402_v63, %v1906_v30  ;;  %v573_v3 = vadd.f32 %v1923_v49, %v540_v56 }
 0x143   :  { %v509_v4 = vadd.f32 %v1911_v35, %v476_v61  ;;  %v478_v5 = vmul.f32 %v1908_v32, %v401_v62  ;;  %v602_v6 = vpack.c.bf16 %v572_v60, %v570_v59 }
 0x144   :  { %v510_v7 = vadd.f32 %v1911_v35, %v477_v0  ;;  %v479_v8 = vmul.f32 %v1908_v32, %v403_v1  ;;  %v603_v9 = vpack.c.bf16 %v573_v3, %v571_v2 }
 0x145   :  { %v541_v10 = vmul.f32 %v509_v4, %v397_v54  ;;  %v511_v11 = vadd.f32 %v1911_v35, %v478_v5 }
 0x146   :  { %v542_v12 = vmul.f32 %v510_v7, %v399_v57  ;;  %v512_v13 = vadd.f32 %v1911_v35, %v479_v8  ;;  %v406_v14 = vpop.f32.mrb[8].mxu0  ;;  %856 = vmatprep.mubr.bf16.mxu1 %v603_v9 }
 0x147   :  { %v543_v15 = vmul.f32 %v511_v11, %v401_v62  ;;  %v407_v16 = vadd.f32 %v406_v14, %v1902_v29  ;;  %v408_v24 = vpop.f32.mrb[9].mxu0  ;;  %857 = vmatmul.mubr.bf16.vlgmr.msra.gmra.mrb[0].mxu1 %v602_v6  ;;  %v574_v34 = vadd.f32 %v1923_v49, %v541_v10 }
 0x148   :  { %v544_v27 = vmul.f32 %v512_v13, %v403_v1  ;;  %v409_v31 = vadd.f32 %v408_v24, %v1906_v30  ;;  %v410_v33 = vpop.f32.mrb[10].mxu0  ;;  %1531 = vmatpush3.bf16.msra.mxu1 %v1854_v17  ;;  %v575_v40 = vadd.f32 %v1923_v49, %v542_v12 }
 0x149   :  { %v576_v36 = vadd.f32 %v1923_v49, %v543_v15  ;;  %v480_v37 = vmul.f32 %v1908_v32, %v407_v16  ;;  %v411_v38 = vadd.f32 %v410_v33, %v1902_v29  ;;  %v412_v39 = vpop.f32.mrb[11].mxu0  ;;  %1524 = vmatprep.subr.bf16.mxu1 %v1859_v18 }
 0x14a   :  { %v577_v41 = vadd.f32 %v1923_v49, %v544_v27  ;;  %v481_v42 = vmul.f32 %v1908_v32, %v409_v31  ;;  %v413_v43 = vadd.f32 %v412_v39, %v1906_v30 }
 0x14b   :  { %v513_v17 = vadd.f32 %v1911_v35, %v480_v37  ;;  %v482_v44 = vmul.f32 %v1908_v32, %v411_v38  ;;  %v604_v45 = vpack.c.bf16 %v576_v36, %v574_v34 }
 0x14c   :  { %v514_v46 = vadd.f32 %v1911_v35, %v481_v42  ;;  %v483_v47 = vmul.f32 %v1908_v32, %v413_v43  ;;  %v605_v48 = vpack.c.bf16 %v577_v41, %v575_v40  ;;  %1532 = vmatpush3.bf16.msra.mxu1 %v1865_v19 }
 0x14d   :  { %v545_v18 = vmul.f32 %v513_v17, %v407_v16  ;;  %v515_v50 = vadd.f32 %v1911_v35, %v482_v44  ;;  %1525 = vmatprep.subr.bf16.mxu1 %v1871_v20 }
 0x14e   :  { %v546_v51 = vmul.f32 %v514_v46, %v409_v31  ;;  %v516_v52 = vadd.f32 %v1911_v35, %v483_v47  ;;  %v416_v53 = vpop.f32.mrb[12].mxu0  ;;  %866 = vmatprep.mubr.bf16.mxu1 %v605_v48 }
 0x14f   :  { %v547_v54 = vmul.f32 %v515_v50, %v411_v38  ;;  %v417_v55 = vadd.f32 %v416_v53, %v1902_v29  ;;  %v418_v56 = vpop.f32.mrb[13].mxu0  ;;  %867 = vmatmul.mubr.bf16.gmra.mrb[4].mxu1 %v604_v45  ;;  %v578_v19 = vadd.f32 %v1923_v49, %v545_v18 }
 0x150   :  { %v548_v57 = vmul.f32 %v516_v52, %v413_v43  ;;  %v419_v58 = vadd.f32 %v418_v56, %v1906_v30  ;;  %v420_v59 = vpop.f32.mrb[14].mxu0  ;;  %1533 = vmatpush3.bf16.msra.mxu1 %v1877_v21  ;;  %v579_v63 = vadd.f32 %v1923_v49, %v546_v51 }
 0x151   :  { %v580_v20 = vadd.f32 %v1923_v49, %v547_v54  ;;  %v484_v60 = vmul.f32 %v1908_v32, %v417_v55  ;;  %v421_v61 = vadd.f32 %v420_v59, %v1902_v29  ;;  %v422_v62 = vpop.f32.mrb[15].mxu0  ;;  %1526 = vmatprep.subr.bf16.mxu1 %v1883_v22 }
 0x152   :  { %v581_v0 = vadd.f32 %v1923_v49, %v548_v57  ;;  %v485_v1 = vmul.f32 %v1908_v32, %v419_v58  ;;  %v423_v2 = vadd.f32 %v422_v62, %v1906_v30 }
 0x153   :  { %v517_v21 = vadd.f32 %v1911_v35, %v484_v60  ;;  %v486_v3 = vmul.f32 %v1908_v32, %v421_v61  ;;  %v606_v4 = vpack.c.bf16 %v580_v20, %v578_v19 }
 0x154   :  { %v518_v5 = vadd.f32 %v1911_v35, %v485_v1  ;;  %v487_v6 = vmul.f32 %v1908_v32, %v423_v2  ;;  %v607_v7 = vpack.c.bf16 %v581_v0, %v579_v63  ;;  %1534 = vmatpush3.bf16.msra.mxu1 %v1889_v23 }
 0x155   :  { %v549_v22 = vmul.f32 %v517_v21, %v417_v55  ;;  %v519_v8 = vadd.f32 %v1911_v35, %v486_v3 }
 0x156   :  { %v550_v9 = vmul.f32 %v518_v5, %v419_v58  ;;  %v520_v10 = vadd.f32 %v1911_v35, %v487_v6  ;;  %v426_v11 = vpop.f32.mrb[16].mxu0  ;;  %876 = vmatprep.mubr.bf16.mxu1 %v607_v7 }
 0x157   :  { %v551_v12 = vmul.f32 %v519_v8, %v421_v61  ;;  %v427_v13 = vadd.f32 %v426_v11, %v1902_v29  ;;  %v428_v14 = vpop.f32.mrb[17].mxu0  ;;  %877 = vmatmul.mubr.bf16.gmra.mrb[8].mxu1 %v606_v4  ;;  %v582_v27 = vadd.f32 %v1923_v49, %v549_v22 }
 0x158   :  { %v552_v15 = vmul.f32 %v520_v10, %v423_v2  ;;  %v429_v16 = vadd.f32 %v428_v14, %v1906_v30  ;;  %v430_v24 = vpop.f32.mrb[18].mxu0  ;;  %v583_v36 = vadd.f32 %v1923_v49, %v550_v9 }
 0x159   :  { %v584_v23 = vadd.f32 %v1923_v49, %v551_v12  ;;  %v488_v31 = vmul.f32 %v1908_v32, %v427_v13  ;;  %v431_v33 = vadd.f32 %v430_v24, %v1902_v29  ;;  %v432_v34 = vpop.f32.mrb[19].mxu0 }
 0x15a   :  { %v585_v37 = vadd.f32 %v1923_v49, %v552_v15  ;;  %v489_v38 = vmul.f32 %v1908_v32, %v429_v16  ;;  %v433_v39 = vadd.f32 %v432_v34, %v1906_v30 }
 0x15b   :  { %v521_v40 = vadd.f32 %v1911_v35, %v488_v31  ;;  %v490_v41 = vmul.f32 %v1908_v32, %v431_v33  ;;  %v608_v42 = vpack.c.bf16 %v584_v23, %v582_v27 }
 0x15c   :  { %v522_v43 = vadd.f32 %v1911_v35, %v489_v38  ;;  %v491_v17 = vmul.f32 %v1908_v32, %v433_v39  ;;  %v609_v44 = vpack.c.bf16 %v585_v37, %v583_v36 }
 0x15d   :  { %v553_v45 = vmul.f32 %v521_v40, %v427_v13  ;;  %v523_v46 = vadd.f32 %v1911_v35, %v490_v41 }
 0x15e   :  { %v554_v47 = vmul.f32 %v522_v43, %v429_v16  ;;  %v524_v48 = vadd.f32 %v1911_v35, %v491_v17  ;;  %v436_v18 = vpop.f32.mrb[20].mxu0  ;;  %886 = vmatprep.mubr.bf16.mxu1 %v609_v44 }
 0x15f   :  { %v555_v50 = vmul.f32 %v523_v46, %v431_v33  ;;  %v437_v51 = vadd.f32 %v436_v18, %v1902_v29  ;;  %v438_v52 = vpop.f32.mrb[21].mxu0  ;;  %887 = vmatmul.mubr.bf16.gmra.mrb[12].mxu1 %v608_v42  ;;  %v586_v56 = vadd.f32 %v1923_v49, %v553_v45 }
 0x160   :  { %v556_v53 = vmul.f32 %v524_v48, %v433_v39  ;;  %v439_v54 = vadd.f32 %v438_v52, %v1906_v30  ;;  %v440_v55 = vpop.f32.mrb[22].mxu0  ;;  %v587_v20 = vadd.f32 %v1923_v49, %v554_v47 }
 0x161   :  { %v588_v57 = vadd.f32 %v1923_v49, %v555_v50  ;;  %v492_v58 = vmul.f32 %v1908_v32, %v437_v51  ;;  %v441_v59 = vadd.f32 %v440_v55, %v1902_v29  ;;  %v442_v19 = vpop.f32.mrb[23].mxu0 }
 0x162   :  { %v589_v60 = vadd.f32 %v1923_v49, %v556_v53  ;;  %v493_v61 = vmul.f32 %v1908_v32, %v439_v54  ;;  %v443_v62 = vadd.f32 %v442_v19, %v1906_v30 }
 0x163   :  { %v525_v63 = vadd.f32 %v1911_v35, %v492_v58  ;;  %v494_v0 = vmul.f32 %v1908_v32, %v441_v59  ;;  %v610_v1 = vpack.c.bf16 %v588_v57, %v586_v56 }
 0x164   :  { %v526_v2 = vadd.f32 %v1911_v35, %v493_v61  ;;  %v495_v21 = vmul.f32 %v1908_v32, %v443_v62  ;;  %v611_v3 = vpack.c.bf16 %v589_v60, %v587_v20 }
 0x165   :  { %v557_v4 = vmul.f32 %v525_v63, %v437_v51  ;;  %v527_v5 = vadd.f32 %v1911_v35, %v494_v0 }
 0x166   :  { %v558_v6 = vmul.f32 %v526_v2, %v439_v54  ;;  %v528_v7 = vadd.f32 %v1911_v35, %v495_v21  ;;  %v446_v22 = vpop.f32.mrb[24].mxu0  ;;  %896 = vmatprep.mubr.bf16.mxu1 %v611_v3 }
 0x167   :  { %v559_v8 = vmul.f32 %v527_v5, %v441_v59  ;;  %v447_v9 = vadd.f32 %v446_v22, %v1902_v29  ;;  %v448_v10 = vpop.f32.mrb[25].mxu0  ;;  %897 = vmatmul.mubr.bf16.gmra.mrb[16].mxu1 %v610_v1  ;;  %v590_v14 = vadd.f32 %v1923_v49, %v557_v4 }
 0x168   :  { %v560_v11 = vmul.f32 %v528_v7, %v443_v62  ;;  %v449_v12 = vadd.f32 %v448_v10, %v1906_v30  ;;  %v450_v13 = vpop.f32.mrb[26].mxu0  ;;  %v591_v23 = vadd.f32 %v1923_v49, %v558_v6  ;;  %v1676_v10 = vld [vmem:[%s2258_s4 + $0x70] sm:$0xff]  }
 0x169   :  { %v592_v15 = vadd.f32 %v1923_v49, %v559_v8  ;;  %v496_v16 = vmul.f32 %v1908_v32, %v447_v9  ;;  %v451_v24 = vadd.f32 %v450_v13, %v1902_v29  ;;  %v452_v27 = vpop.f32.mrb[27].mxu0  ;;  %v1673_v8 = vld [vmem:[%s2258_s4 + $0x20] sm:$0xff]   ;;  %v1679_v13 = vld [vmem:[%s2258_s4 + $0x38] sm:$0xff]  }
 0x16a   :  { %v593_v31 = vadd.f32 %v1923_v49, %v560_v11  ;;  %v497_v33 = vmul.f32 %v1908_v32, %v449_v12  ;;  %v453_v34 = vadd.f32 %v452_v27, %v1906_v30  ;;  %v1677_v11 = vld [vmem:[%s2258_s4 + $0x30] sm:$0xff]   ;;  %v2084_v27 = vstv %s942_s17 }
 0x16b   :  { %v529_v36 = vadd.f32 %v1911_v35, %v496_v16  ;;  %v498_v37 = vmul.f32 %v1908_v32, %v451_v24  ;;  %v612_v38 = vpack.c.bf16 %v592_v15, %v590_v14  ;;  %v1406_v14 = vld [vmem:[%s2256_s2 + $0x2] sm:$0x3] }
 0x16c   :  { %v530_v39 = vadd.f32 %v1911_v35, %v497_v33  ;;  %v499_v40 = vmul.f32 %v1908_v32, %v453_v34  ;;  %v613_v41 = vpack.c.bf16 %v593_v31, %v591_v23  ;;  %v2078_v15 = vrot.slane %v1406_v14, %v104_v26 }
 0x16d   :  { %v561_v42 = vmul.f32 %v529_v36, %v447_v9  ;;  %v531_v43 = vadd.f32 %v1911_v35, %v498_v37  ;;  %v1675_v9 = vld [vmem:[%s2258_s4 + $0x28] sm:$0xff]   ;;  %v2082_v16 = vrot.slane %v1406_v14, %v108_v28  ;;  %v2087_v33 = vstv %s1440_s15 }
 0x16e   :  { %v562_v17 = vmul.f32 %v530_v39, %v449_v12  ;;  %v532_v44 = vadd.f32 %v1911_v35, %v499_v40  ;;  %v456_v45 = vpop.f32.mrb[28].mxu0  ;;  %906 = vmatprep.mubr.bf16.mxu1 %v613_v41  ;;  %v1678_v12 = vld [vmem:[%s2258_s4 + $0x78] sm:$0xff]  }
 0x16f   :  { %v563_v46 = vmul.f32 %v531_v43, %v451_v24  ;;  %v457_v47 = vadd.f32 %v456_v45, %v1902_v29  ;;  %v458_v48 = vpop.f32.mrb[29].mxu0  ;;  %907 = vmatmul.mubr.bf16.gmra.mrb[20].mxu1 %v612_v38  ;;  %v594_v52 = vadd.f32 %v1923_v49, %v561_v42 }
 0x170   :  { %v564_v18 = vmul.f32 %v532_v44, %v453_v34  ;;  %v459_v50 = vadd.f32 %v458_v48, %v1906_v30  ;;  %v460_v51 = vpop.f32.mrb[30].mxu0  ;;  %v595_v57 = vadd.f32 %v1923_v49, %v562_v17 }
 0x171   :  { %v596_v53 = vadd.f32 %v1923_v49, %v563_v46  ;;  %v500_v54 = vmul.f32 %v1908_v32, %v457_v47  ;;  %v461_v55 = vadd.f32 %v460_v51, %v1902_v29  ;;  %v462_v56 = vpop.f32.mrb[31].mxu0 }
 0x172   :  { %v597_v58 = vadd.f32 %v1923_v49, %v564_v18  ;;  %v501_v59 = vmul.f32 %v1908_v32, %v459_v50  ;;  %v463_v19 = vadd.f32 %v462_v56, %v1906_v30 }
 0x173   :  { %v533_v20 = vadd.f32 %v1911_v35, %v500_v54  ;;  %v502_v60 = vmul.f32 %v1908_v32, %v461_v55  ;;  %v614_v61 = vpack.c.bf16 %v596_v53, %v594_v52 }
 0x174   :  { %v534_v62 = vadd.f32 %v1911_v35, %v501_v59  ;;  %v503_v63 = vmul.f32 %v1908_v32, %v463_v19  ;;  %v615_v0 = vpack.c.bf16 %v597_v58, %v595_v57 }
 0x175   :  { %v565_v29 = vmul.f32 %v533_v20, %v457_v47  ;;  %v535_v1 = vadd.f32 %v1911_v35, %v502_v60 }
 0x176   :  { %v566_v2 = vmul.f32 %v534_v62, %v459_v50  ;;  %v536_v21 = vadd.f32 %v1911_v35, %v503_v63  ;;  %916 = vmatprep.mubr.bf16.mxu1 %v615_v0  ;;  %v1672_v35 = vld [vmem:[%s2258_s4 + $0x60] sm:$0xff]  }
 0x177   :  { %v567_v3 = vmul.f32 %v535_v1, %v461_v55  ;;  %917 = vmatmul.mubr.bf16.gmra.mrb[24].mxu1 %v614_v61  ;;  %v598_v4 = vadd.f32 %v1923_v49, %v565_v29  ;;  %1467 = vmatprep.subr.bf16.mxu0 %v1672_v35 }
 0x178   :  { %v568_v30 = vmul.f32 %v536_v21, %v463_v19  ;;  %v599_v6 = vadd.f32 %v1923_v49, %v566_v2  ;;  %1527 = vmatprep.subr.bf16.mxu1 %v1672_v35  ;;  %1468 = vmatpush3.bf16.msra.mxu0 %v1673_v8 }
 0x179   :  { %v600_v5 = vadd.f32 %v1923_v49, %v567_v3  ;;  %1535 = vmatpush3.bf16.msra.mxu1 %v1673_v8 }
 0x17a   :  { %v601_v7 = vadd.f32 %v1923_v49, %v568_v30  ;;  %v1674_v49 = vld [vmem:[%s2258_s4 + $0x68] sm:$0xff]   ;;  %s940_s4 = smul.f32 -1.0, %s1441_s13 }
 0x17b   :  { %v616_v32 = vpack.c.bf16 %v600_v5, %v598_v4  ;;  %1469 = vmatprep.subr.bf16.mxu0 %v1674_v49  ;;  %1528 = vmatprep.subr.bf16.mxu1 %v1674_v49 }
 0x17c   :  { %v617_v22 = vpack.c.bf16 %v601_v7, %v599_v6  ;;  %1470 = vmatpush3.bf16.msra.mxu0 %v1675_v9  ;;  %s941_s2 = sadd.f32 %s1439_s16, %s940_s4 }
 0x17d   :  { %1536 = vmatpush3.bf16.msra.mxu1 %v1675_v9  ;;  %1471 = vmatprep.subr.bf16.mxu0 %v1676_v10 }
 0x17e   :  { %926 = vmatprep.mubr.bf16.mxu1 %v617_v22  ;;  %1529 = vmatprep.subr.bf16.mxu1 %v1676_v10  ;;  %v2099_v44 = vstv %s941_s2 }
 0x17f   :  { %927 = vmatmul.mubr.bf16.gmra.mrb[28].mxu1 %v616_v32 }
 0x180   :  { %1472 = vmatpush3.bf16.msra.mxu0 %v1677_v11 }
 0x181   :  { %1537 = vmatpush3.bf16.msra.mxu1 %v1677_v11  ;;  %1473 = vmatprep.subr.bf16.mxu0 %v1678_v12 }
 0x182   :  { %1530 = vmatprep.subr.bf16.mxu1 %v1678_v12 }
 0x184   :  { %1474 = vmatpush3.bf16.msra.mxu0 %v1679_v13 }
 0x185   :  { %1538 = vmatpush3.bf16.msra.mxu1 %v1679_v13 }
 0x21a   :  { %v858_v24 = vpop.f32.mrb[0].mxu1 }
 0x21b   :  { %v859_v23 = vadd.f32 %v858_v24, %v2078_v15  ;;  %v860_v31 = vpop.f32.mrb[1].mxu1 }
 0x21c   :  { %v861_v34 = vadd.f32 %v860_v31, %v2082_v16  ;;  %v862_v36 = vpop.f32.mrb[2].mxu1 }
 0x21d   :  { %v944_v37 = vmul.f32 %v2084_v27, %v859_v23  ;;  %v863_v26 = vadd.f32 %v862_v36, %v2078_v15  ;;  %v864_v38 = vpop.f32.mrb[3].mxu1 }
 0x21e   :  { %v945_v25 = vmul.f32 %v2084_v27, %v861_v34  ;;  %v865_v28 = vadd.f32 %v864_v38, %v2082_v16 }
 0x21f   :  { %v977_v39 = vadd.f32 %v2087_v33, %v944_v37  ;;  %v946_v40 = vmul.f32 %v2084_v27, %v863_v26 }
 0x220   :  { %v978_v41 = vadd.f32 %v2087_v33, %v945_v25  ;;  %v947_v42 = vmul.f32 %v2084_v27, %v865_v28 }
 0x221   :  { %v1009_v43 = vmul.f32 %v977_v39, %v859_v23  ;;  %v979_v17 = vadd.f32 %v2087_v33, %v946_v40 }
 0x222   :  { %v1010_v45 = vmul.f32 %v978_v41, %v861_v34  ;;  %v980_v46 = vadd.f32 %v2087_v33, %v947_v42  ;;  %v868_v47 = vpop.f32.mrb[4].mxu1 }
 0x223   :  { %v1011_v48 = vmul.f32 %v979_v17, %v863_v26  ;;  %v869_v18 = vadd.f32 %v868_v47, %v2078_v15  ;;  %v870_v50 = vpop.f32.mrb[5].mxu1  ;;  %v1042_v54 = vadd.f32 %v2099_v44, %v1009_v43 }
 0x224   :  { %v1012_v51 = vmul.f32 %v980_v46, %v865_v28  ;;  %v871_v52 = vadd.f32 %v870_v50, %v2082_v16  ;;  %v872_v53 = vpop.f32.mrb[6].mxu1  ;;  %v1043_v59 = vadd.f32 %v2099_v44, %v1010_v45 }
 0x225   :  { %v1044_v55 = vadd.f32 %v2099_v44, %v1011_v48  ;;  %v948_v56 = vmul.f32 %v2084_v27, %v869_v18  ;;  %v873_v57 = vadd.f32 %v872_v53, %v2078_v15  ;;  %v874_v58 = vpop.f32.mrb[7].mxu1 }
 0x226   :  { %v1045_v19 = vadd.f32 %v2099_v44, %v1012_v51  ;;  %v949_v20 = vmul.f32 %v2084_v27, %v871_v52  ;;  %v875_v60 = vadd.f32 %v874_v58, %v2082_v16 }
 0x227   :  { %v1074_v61 = vpack.c.bf16 %v1044_v55, %v1042_v54  ;;  %v981_v62 = vadd.f32 %v2087_v33, %v948_v56  ;;  %v950_v63 = vmul.f32 %v2084_v27, %v873_v57 }
 0x228   :  { %v982_v0 = vadd.f32 %v2087_v33, %v949_v20  ;;  %v951_v29 = vmul.f32 %v2084_v27, %v875_v60  ;;  %v1075_v1 = vpack.c.bf16 %v1045_v19, %v1043_v59 }
 0x229   :  { %v1013_v2 = vmul.f32 %v981_v62, %v869_v18  ;;  %v983_v21 = vadd.f32 %v2087_v33, %v950_v63 }
 0x22a   :  { %v1014_v3 = vmul.f32 %v982_v0, %v871_v52  ;;  %v984_v30 = vadd.f32 %v2087_v33, %v951_v29  ;;  %v878_v4 = vpop.f32.mrb[8].mxu1  ;;  %1257 = vmatprep.mubr.bf16.mxu0 %v1075_v1 }
 0x22b   :  { %v1015_v5 = vmul.f32 %v983_v21, %v873_v57  ;;  %v879_v6 = vadd.f32 %v878_v4, %v2078_v15  ;;  %v880_v7 = vpop.f32.mrb[9].mxu1  ;;  %1258 = vmatmul.mubr.bf16.vlgmr.msra.gmra.mrb[32].mxu0 %v1074_v61  ;;  %v1046_v8 = vadd.f32 %v2099_v44, %v1013_v2 }
 0x22c   :  { %v1016_v32 = vmul.f32 %v984_v30, %v875_v60  ;;  %v881_v22 = vadd.f32 %v880_v7, %v2082_v16  ;;  %v882_v35 = vpop.f32.mrb[10].mxu1  ;;  %v1047_v12 = vadd.f32 %v2099_v44, %v1014_v3 }
 0x22d   :  { %v1048_v49 = vadd.f32 %v2099_v44, %v1015_v5  ;;  %v952_v9 = vmul.f32 %v2084_v27, %v879_v6  ;;  %v883_v10 = vadd.f32 %v882_v35, %v2078_v15  ;;  %v884_v11 = vpop.f32.mrb[11].mxu1 }
 0x22e   :  { %v1049_v13 = vadd.f32 %v2099_v44, %v1016_v32  ;;  %v953_v14 = vmul.f32 %v2084_v27, %v881_v22  ;;  %v885_v24 = vadd.f32 %v884_v11, %v2082_v16 }
 0x22f   :  { %v985_v23 = vadd.f32 %v2087_v33, %v952_v9  ;;  %v954_v31 = vmul.f32 %v2084_v27, %v883_v10  ;;  %v1076_v34 = vpack.c.bf16 %v1048_v49, %v1046_v8 }
 0x230   :  { %v986_v36 = vadd.f32 %v2087_v33, %v953_v14  ;;  %v955_v37 = vmul.f32 %v2084_v27, %v885_v24  ;;  %v1077_v26 = vpack.c.bf16 %v1049_v13, %v1047_v12 }
 0x231   :  { %v1017_v38 = vmul.f32 %v985_v23, %v879_v6  ;;  %v987_v25 = vadd.f32 %v2087_v33, %v954_v31 }
 0x232   :  { %v1018_v28 = vmul.f32 %v986_v36, %v881_v22  ;;  %v988_v39 = vadd.f32 %v2087_v33, %v955_v37  ;;  %v888_v40 = vpop.f32.mrb[12].mxu1  ;;  %1265 = vmatprep.mubr.bf16.mxu0 %v1077_v26 }
 0x233   :  { %v1019_v41 = vmul.f32 %v987_v25, %v883_v10  ;;  %v889_v42 = vadd.f32 %v888_v40, %v2078_v15  ;;  %v890_v43 = vpop.f32.mrb[13].mxu1  ;;  %1266 = vmatmul.mubr.bf16.gmra.mrb[36].mxu0 %v1076_v34  ;;  %v1050_v47 = vadd.f32 %v2099_v44, %v1017_v38 }
 0x234   :  { %v1020_v17 = vmul.f32 %v988_v39, %v885_v24  ;;  %v891_v45 = vadd.f32 %v890_v43, %v2082_v16  ;;  %v892_v46 = vpop.f32.mrb[14].mxu1  ;;  %v1051_v52 = vadd.f32 %v2099_v44, %v1018_v28 }
 0x235   :  { %v1052_v48 = vadd.f32 %v2099_v44, %v1019_v41  ;;  %v956_v18 = vmul.f32 %v2084_v27, %v889_v42  ;;  %v893_v50 = vadd.f32 %v892_v46, %v2078_v15  ;;  %v894_v51 = vpop.f32.mrb[15].mxu1 }
 0x236   :  { %v1053_v53 = vadd.f32 %v2099_v44, %v1020_v17  ;;  %v957_v54 = vmul.f32 %v2084_v27, %v891_v45  ;;  %v895_v55 = vadd.f32 %v894_v51, %v2082_v16 }
 0x237   :  { %v989_v56 = vadd.f32 %v2087_v33, %v956_v18  ;;  %v958_v57 = vmul.f32 %v2084_v27, %v893_v50  ;;  %v1078_v58 = vpack.c.bf16 %v1052_v48, %v1050_v47 }
 0x238   :  { %v990_v59 = vadd.f32 %v2087_v33, %v957_v54  ;;  %v959_v19 = vmul.f32 %v2084_v27, %v895_v55  ;;  %v1079_v20 = vpack.c.bf16 %v1053_v53, %v1051_v52 }
 0x239   :  { %v1021_v60 = vmul.f32 %v989_v56, %v889_v42  ;;  %v991_v61 = vadd.f32 %v2087_v33, %v958_v57 }
 0x23a   :  { %v1022_v62 = vmul.f32 %v990_v59, %v891_v45  ;;  %v992_v63 = vadd.f32 %v2087_v33, %v959_v19  ;;  %v898_v0 = vpop.f32.mrb[16].mxu1  ;;  %1273 = vmatprep.mubr.bf16.mxu0 %v1079_v20 }
 0x23b   :  { %v1023_v29 = vmul.f32 %v991_v61, %v893_v50  ;;  %v899_v1 = vadd.f32 %v898_v0, %v2078_v15  ;;  %v900_v2 = vpop.f32.mrb[17].mxu1  ;;  %1274 = vmatmul.mubr.bf16.gmra.mrb[40].mxu0 %v1078_v58  ;;  %v1054_v4 = vadd.f32 %v2099_v44, %v1021_v60 }
 0x23c   :  { %v1024_v21 = vmul.f32 %v992_v63, %v895_v55  ;;  %v901_v3 = vadd.f32 %v900_v2, %v2082_v16  ;;  %v902_v30 = vpop.f32.mrb[18].mxu1  ;;  %v1055_v22 = vadd.f32 %v2099_v44, %v1022_v62 }
 0x23d   :  { %v1056_v5 = vadd.f32 %v2099_v44, %v1023_v29  ;;  %v960_v6 = vmul.f32 %v2084_v27, %v899_v1  ;;  %v903_v7 = vadd.f32 %v902_v30, %v2078_v15  ;;  %v904_v32 = vpop.f32.mrb[19].mxu1 }
 0x23e   :  { %v1057_v35 = vadd.f32 %v2099_v44, %v1024_v21  ;;  %v961_v8 = vmul.f32 %v2084_v27, %v901_v3  ;;  %v905_v49 = vadd.f32 %v904_v32, %v2082_v16 }
 0x23f   :  { %v993_v9 = vadd.f32 %v2087_v33, %v960_v6  ;;  %v962_v10 = vmul.f32 %v2084_v27, %v903_v7  ;;  %v1080_v11 = vpack.c.bf16 %v1056_v5, %v1054_v4 }
 0x240   :  { %v994_v12 = vadd.f32 %v2087_v33, %v961_v8  ;;  %v963_v13 = vmul.f32 %v2084_v27, %v905_v49  ;;  %v1081_v14 = vpack.c.bf16 %v1057_v35, %v1055_v22 }
 0x241   :  { %v1025_v24 = vmul.f32 %v993_v9, %v899_v1  ;;  %v995_v23 = vadd.f32 %v2087_v33, %v962_v10 }
 0x242   :  { %v1026_v31 = vmul.f32 %v994_v12, %v901_v3  ;;  %v996_v34 = vadd.f32 %v2087_v33, %v963_v13  ;;  %v908_v36 = vpop.f32.mrb[20].mxu1  ;;  %1281 = vmatprep.mubr.bf16.mxu0 %v1081_v14 }
 0x243   :  { %v1027_v37 = vmul.f32 %v995_v23, %v903_v7  ;;  %v909_v26 = vadd.f32 %v908_v36, %v2078_v15  ;;  %v910_v38 = vpop.f32.mrb[21].mxu1  ;;  %1282 = vmatmul.mubr.bf16.gmra.mrb[44].mxu0 %v1080_v11  ;;  %v1058_v40 = vadd.f32 %v2099_v44, %v1025_v24 }
 0x244   :  { %v1028_v25 = vmul.f32 %v996_v34, %v905_v49  ;;  %v911_v28 = vadd.f32 %v910_v38, %v2082_v16  ;;  %v912_v39 = vpop.f32.mrb[22].mxu1  ;;  %v1059_v45 = vadd.f32 %v2099_v44, %v1026_v31 }
 0x245   :  { %v1060_v41 = vadd.f32 %v2099_v44, %v1027_v37  ;;  %v964_v42 = vmul.f32 %v2084_v27, %v909_v26  ;;  %v913_v43 = vadd.f32 %v912_v39, %v2078_v15  ;;  %v914_v17 = vpop.f32.mrb[23].mxu1 }
 0x246   :  { %v1061_v46 = vadd.f32 %v2099_v44, %v1028_v25  ;;  %v965_v47 = vmul.f32 %v2084_v27, %v911_v28  ;;  %v915_v48 = vadd.f32 %v914_v17, %v2082_v16 }
 0x247   :  { %v1082_v18 = vpack.c.bf16 %v1060_v41, %v1058_v40  ;;  %v997_v50 = vadd.f32 %v2087_v33, %v964_v42  ;;  %v966_v51 = vmul.f32 %v2084_v27, %v913_v43 }
 0x248   :  { %v998_v52 = vadd.f32 %v2087_v33, %v965_v47  ;;  %v967_v53 = vmul.f32 %v2084_v27, %v915_v48  ;;  %v1083_v54 = vpack.c.bf16 %v1061_v46, %v1059_v45 }
 0x249   :  { %v1029_v55 = vmul.f32 %v997_v50, %v909_v26  ;;  %v999_v56 = vadd.f32 %v2087_v33, %v966_v51 }
 0x24a   :  { %v1030_v57 = vmul.f32 %v998_v52, %v911_v28  ;;  %v1000_v58 = vadd.f32 %v2087_v33, %v967_v53  ;;  %v918_v59 = vpop.f32.mrb[24].mxu1  ;;  %1289 = vmatprep.mubr.bf16.mxu1 %v1083_v54 }
 0x24b   :  { %v1031_v19 = vmul.f32 %v999_v56, %v913_v43  ;;  %v919_v20 = vadd.f32 %v918_v59, %v2078_v15  ;;  %v920_v60 = vpop.f32.mrb[25].mxu1  ;;  %1290 = vmatmul.mubr.bf16.vlgmr.msra.gmra.mrb[32].mxu1 %v1082_v18  ;;  %v1062_v0 = vadd.f32 %v2099_v44, %v1029_v55 }
 0x24c   :  { %v1032_v61 = vmul.f32 %v1000_v58, %v915_v48  ;;  %v921_v62 = vadd.f32 %v920_v60, %v2082_v16  ;;  %v922_v63 = vpop.f32.mrb[26].mxu1  ;;  %v1063_v3 = vadd.f32 %v2099_v44, %v1030_v57 }
 0x24d   :  { %v1064_v29 = vadd.f32 %v2099_v44, %v1031_v19  ;;  %v968_v1 = vmul.f32 %v2084_v27, %v919_v20  ;;  %v923_v2 = vadd.f32 %v922_v63, %v2078_v15  ;;  %v924_v21 = vpop.f32.mrb[27].mxu1 }
 0x24e   :  { %v1065_v30 = vadd.f32 %v2099_v44, %v1032_v61  ;;  %v969_v4 = vmul.f32 %v2084_v27, %v921_v62  ;;  %v925_v5 = vadd.f32 %v924_v21, %v2082_v16 }
 0x24f   :  { %v1001_v6 = vadd.f32 %v2087_v33, %v968_v1  ;;  %v970_v7 = vmul.f32 %v2084_v27, %v923_v2  ;;  %v1084_v32 = vpack.c.bf16 %v1064_v29, %v1062_v0 }
 0x250   :  { %v1002_v22 = vadd.f32 %v2087_v33, %v969_v4  ;;  %v971_v35 = vmul.f32 %v2084_v27, %v925_v5  ;;  %v1085_v8 = vpack.c.bf16 %v1065_v30, %v1063_v3 }
 0x251   :  { %v1033_v49 = vmul.f32 %v1001_v6, %v919_v20  ;;  %v1003_v9 = vadd.f32 %v2087_v33, %v970_v7 }
 0x252   :  { %v1034_v10 = vmul.f32 %v1002_v22, %v921_v62  ;;  %v1004_v11 = vadd.f32 %v2087_v33, %v971_v35  ;;  %v928_v12 = vpop.f32.mrb[28].mxu1  ;;  %1297 = vmatprep.mubr.bf16.mxu1 %v1085_v8 }
 0x253   :  { %v1035_v13 = vmul.f32 %v1003_v9, %v923_v2  ;;  %v929_v14 = vadd.f32 %v928_v12, %v2078_v15  ;;  %v930_v24 = vpop.f32.mrb[29].mxu1  ;;  %1298 = vmatmul.mubr.bf16.gmra.mrb[36].mxu1 %v1084_v32  ;;  %v1066_v36 = vadd.f32 %v2099_v44, %v1033_v49 }
 0x254   :  { %v1036_v23 = vmul.f32 %v1004_v11, %v925_v5  ;;  %v931_v31 = vadd.f32 %v930_v24, %v2082_v16  ;;  %v932_v34 = vpop.f32.mrb[30].mxu1  ;;  %v1067_v28 = vadd.f32 %v2099_v44, %v1034_v10 }
 0x255   :  { %v1068_v37 = vadd.f32 %v2099_v44, %v1035_v13  ;;  %v972_v26 = vmul.f32 %v2084_v27, %v929_v14  ;;  %v933_v38 = vadd.f32 %v932_v34, %v2078_v15  ;;  %v934_v25 = vpop.f32.mrb[31].mxu1 }
 0x256   :  { %v1069_v39 = vadd.f32 %v2099_v44, %v1036_v23  ;;  %v973_v40 = vmul.f32 %v2084_v27, %v931_v31  ;;  %v935_v41 = vadd.f32 %v934_v25, %v2082_v16 }
 0x257   :  { %v1005_v42 = vadd.f32 %v2087_v33, %v972_v26  ;;  %v974_v43 = vmul.f32 %v2084_v27, %v933_v38  ;;  %v1086_v17 = vpack.c.bf16 %v1068_v37, %v1066_v36 }
 0x258   :  { %v1006_v45 = vadd.f32 %v2087_v33, %v973_v40  ;;  %v975_v46 = vmul.f32 %v2084_v27, %v935_v41  ;;  %v1087_v47 = vpack.c.bf16 %v1069_v39, %v1067_v28 }
 0x259   :  { %v1037_v15 = vmul.f32 %v1005_v42, %v929_v14  ;;  %v1007_v48 = vadd.f32 %v2087_v33, %v974_v43 }
 0x25a   :  { %v1038_v18 = vmul.f32 %v1006_v45, %v931_v31  ;;  %v1008_v50 = vadd.f32 %v2087_v33, %v975_v46  ;;  %1305 = vmatprep.mubr.bf16.mxu1 %v1087_v47  ;;  %v2221_v33 = vld [vmem:[%s2259_s5] ss:$0 sm:$0xff]  ;;  %s1746_s5 = smov [#allocation7]  }
 0x25b   :  { %v1039_v51 = vmul.f32 %v1007_v48, %v933_v38  ;;  %1306 = vmatmul.mubr.bf16.gmra.mrb[40].mxu1 %v1086_v17  ;;  %v1070_v52 = vadd.f32 %v2099_v44, %v1037_v15  ;;  %s1343_s20 = sshll.u32 %s1746_s5, 4  ;;  %s1344_s20 = int_to_ptr.vmem [resolvable:$true] %s1343_s20 }
 0x25c   :  { %v1040_v16 = vmul.f32 %v1008_v50, %v935_v41  ;;  %v1071_v54 = vadd.f32 %v2099_v44, %v1038_v18  ;;  %s1714_s21 = scalar_lea.vmem %s1344_s20, 2048  ;;  %p1719_p0 = scmp.lt.s32.totalorder %s1344_s20, %s1344_s20 }
 0x25d   :  { %v1072_v53 = vadd.f32 %v2099_v44, %v1039_v51  ;;  %p1715_p13 = scmp.ne.s32.totalorder %s1344_s20, %s1714_s21  ;;  %p1720_p1 = scmp.lt.s32.totalorder %s1714_s21, %s1714_s21 }
 0x25e   :  { %v1073_v55 = vadd.f32 %v2099_v44, %v1040_v16 }
 0x25f   :  { %v1088_v27 = vpack.c.bf16 %v1072_v53, %v1070_v52  ;;  %p1721_p2 = por %p1720_p1, %p1719_p0 }
 0x260   :  { %v1089_v56 = vpack.c.bf16 %v1073_v55, %v1071_v54 }
 0x261   :  { %p1722_p3 = pnand %p1721_p2, %p1715_p13 }
 0x262   :  { %1313 = vmatprep.mubr.bf16.mxu1 %v1089_v56 }
 0x263   :  { %1314 = vmatmul.mubr.bf16.gmra.mrb[44].mxu1 %v1088_v27 }
 0x2fe   :  { %v1475_v57 = vpop.f32.mrb[32].mxu0 }
 0x2ff   :  { %v1476_v58 = vpop.f32.mrb[33].mxu0 }
 0x300   :  { %v1477_v59 = vadd.f32 %v1476_v58, %v1475_v57  ;;  %v1478_v19 = vpop.f32.mrb[34].mxu0 }
 0x301   :  { %v1479_v20 = vpop.f32.mrb[35].mxu0 }
 0x302   :  { %v1260_v60 = vadd.f32 %v1477_v59, %v2221_v33  ;;  %v1480_v61 = vadd.f32 %v1479_v20, %v1478_v19 }
 0x304   :  { %1322 = vst [vmem:[#allocation7] sm:$0xff] %v1260_v60  ;;  %v1263_v44 = vadd.f32 %v1480_v61, %v2221_v33 }
 0x306   :  { %1323 = vst [vmem:[#allocation7 + $0x8] sm:$0xff] %v1263_v44  ;;  %v1481_v62 = vpop.f32.mrb[36].mxu0 }
 0x307   :  { %v1482_v63 = vpop.f32.mrb[37].mxu0 }
 0x308   :  { %v1483_v0 = vadd.f32 %v1482_v63, %v1481_v62  ;;  %v1484_v29 = vpop.f32.mrb[38].mxu0 }
 0x309   :  { %v1485_v1 = vpop.f32.mrb[39].mxu0 }
 0x30a   :  { %v1268_v2 = vadd.f32 %v1483_v0, %v2221_v33  ;;  %v1486_v21 = vadd.f32 %v1485_v1, %v1484_v29 }
 0x30c   :  { %1324 = vst [vmem:[#allocation7 + $0x10] sm:$0xff] %v1268_v2  ;;  %v1271_v3 = vadd.f32 %v1486_v21, %v2221_v33 }
 0x30e   :  { %1325 = vst [vmem:[#allocation7 + $0x18] sm:$0xff] %v1271_v3  ;;  %v1487_v30 = vpop.f32.mrb[40].mxu0 }
 0x30f   :  { %v1488_v4 = vpop.f32.mrb[41].mxu0 }
 0x310   :  { %v1489_v5 = vadd.f32 %v1488_v4, %v1487_v30  ;;  %v1490_v6 = vpop.f32.mrb[42].mxu0 }
 0x311   :  { %v1491_v7 = vpop.f32.mrb[43].mxu0 }
 0x312   :  { %v1276_v32 = vadd.f32 %v1489_v5, %v2221_v33  ;;  %v1492_v22 = vadd.f32 %v1491_v7, %v1490_v6 }
 0x314   :  { %1326 = vst [vmem:[#allocation7 + $0x20] sm:$0xff] %v1276_v32  ;;  %v1279_v35 = vadd.f32 %v1492_v22, %v2221_v33 }
 0x316   :  { %1327 = vst [vmem:[#allocation7 + $0x28] sm:$0xff] %v1279_v35  ;;  %v1493_v8 = vpop.f32.mrb[44].mxu0 }
 0x317   :  { %v1494_v49 = vpop.f32.mrb[45].mxu0 }
 0x318   :  { %v1495_v9 = vadd.f32 %v1494_v49, %v1493_v8  ;;  %v1496_v10 = vpop.f32.mrb[46].mxu0 }
 0x319   :  { %v1497_v11 = vpop.f32.mrb[47].mxu0 }
 0x31a   :  { %v1284_v12 = vadd.f32 %v1495_v9, %v2221_v33  ;;  %v1498_v13 = vadd.f32 %v1497_v11, %v1496_v10 }
 0x31c   :  { %1328 = vst [vmem:[#allocation7 + $0x30] sm:$0xff] %v1284_v12  ;;  %v1287_v14 = vadd.f32 %v1498_v13, %v2221_v33 }
 0x31e   :  { %1329 = vst [vmem:[#allocation7 + $0x38] sm:$0xff] %v1287_v14  ;;  %v1499_v24 = vpop.f32.mrb[32].mxu1 }
 0x31f   :  { %v1500_v23 = vpop.f32.mrb[33].mxu1 }
 0x320   :  { %v1501_v31 = vadd.f32 %v1500_v23, %v1499_v24  ;;  %v1502_v34 = vpop.f32.mrb[34].mxu1 }
 0x321   :  { %v1503_v36 = vpop.f32.mrb[35].mxu1 }
 0x322   :  { %v1292_v37 = vadd.f32 %v1501_v31, %v2221_v33  ;;  %v1504_v26 = vadd.f32 %v1503_v36, %v1502_v34 }
 0x324   :  { %1330 = vst [vmem:[#allocation7 + $0x40] sm:$0xff] %v1292_v37  ;;  %v1295_v38 = vadd.f32 %v1504_v26, %v2221_v33 }
 0x326   :  { %1331 = vst [vmem:[#allocation7 + $0x48] sm:$0xff] %v1295_v38  ;;  %v1505_v25 = vpop.f32.mrb[36].mxu1 }
 0x327   :  { %v1506_v28 = vpop.f32.mrb[37].mxu1 }
 0x328   :  { %v1507_v39 = vadd.f32 %v1506_v28, %v1505_v25  ;;  %v1508_v40 = vpop.f32.mrb[38].mxu1 }
 0x329   :  { %v1509_v41 = vpop.f32.mrb[39].mxu1 }
 0x32a   :  { %v1300_v42 = vadd.f32 %v1507_v39, %v2221_v33  ;;  %v1510_v43 = vadd.f32 %v1509_v41, %v1508_v40 }
 0x32c   :  { %1332 = vst [vmem:[#allocation7 + $0x50] sm:$0xff] %v1300_v42  ;;  %v1303_v17 = vadd.f32 %v1510_v43, %v2221_v33 }
 0x32e   :  { %1333 = vst [vmem:[#allocation7 + $0x58] sm:$0xff] %v1303_v17  ;;  %v1511_v45 = vpop.f32.mrb[40].mxu1 }
 0x32f   :  { %v1512_v46 = vpop.f32.mrb[41].mxu1 }
 0x330   :  { %v1513_v47 = vadd.f32 %v1512_v46, %v1511_v45  ;;  %v1514_v15 = vpop.f32.mrb[42].mxu1 }
 0x331   :  { %v1515_v48 = vpop.f32.mrb[43].mxu1 }
 0x332   :  { %v1308_v18 = vadd.f32 %v1513_v47, %v2221_v33  ;;  %v1516_v50 = vadd.f32 %v1515_v48, %v1514_v15 }
 0x334   :  { %1334 = vst [vmem:[#allocation7 + $0x60] sm:$0xff] %v1308_v18  ;;  %v1311_v51 = vadd.f32 %v1516_v50, %v2221_v33 }
 0x336   :  { %1335 = vst [vmem:[#allocation7 + $0x68] sm:$0xff] %v1311_v51  ;;  %v1517_v16 = vpop.f32.mrb[44].mxu1 }
 0x337   :  { %v1518_v52 = vpop.f32.mrb[45].mxu1 }
 0x338   :  { %v1519_v53 = vadd.f32 %v1518_v52, %v1517_v16  ;;  %v1520_v54 = vpop.f32.mrb[46].mxu1 }
 0x339   :  { %v1521_v55 = vpop.f32.mrb[47].mxu1 }
 0x33a   :  { %v1316_v27 = vadd.f32 %v1519_v53, %v2221_v33  ;;  %v1522_v56 = vadd.f32 %v1521_v55, %v1520_v54 }
 0x33c   :  { %1336 = vst [vmem:[#allocation7 + $0x70] sm:$0xff] %v1316_v27  ;;  %v1319_v57 = vadd.f32 %v1522_v56, %v2221_v33 }
 0x33e   :  { %1337 = vst [vmem:[#allocation7 + $0x78] sm:$0xff] %v1319_v57 }
 0x33f   :  { %1725 = shalt.err (!%p1722_p3)
}
 0x340   :  { %s1726_s0 = scalar_lea.hbm %s2260_s6, 2048 }
 0x341   :  { %p1727_p4 = scmp.ne.s32.totalorder %s2260_s6, %s1726_s0  ;;  %p1730_p5 = scmp.lt.u32.totalorder %s1726_s0, %s2260_s6 }
 0x343   :  { %p1732_p6 = pnand %p1730_p5, %p1727_p4 }
 0x345   :  { %1735 = shalt.err (!%p1732_p6)
}
 0x346   :  { %1349 = dma.vmem_to_hbm [thread:$0]  %s1344_s20, 2048, %s2260_s6, [#allocation4], %s1743_s3, %s1743_s3, %s1744_s10  }
 0x347   :  { %1740 = dma.done.wait [#allocation4], 2048  }
 0x348   :  { %1741 = vsyncadd [#allocation4], 4294965248 }
 0x349   :  { %1353 = vsyncpa [#allocation3], 1 }
 0x34a   :  { %1354 = vsyncpa [#allocation4], 1 }
 0x34b   :  { %1355 = vsyncpa [#allocation5], 1 }

</bundles_post_ra>
